<compile_context>
chip_gen: v5e
topology: v5e:2x2
jax: 0.10.0
libtpu: 0.0.40
codegen_flags: <defaults>
</compile_context>

<pallas_src>
import functools

import jax
import jax.numpy as jnp
from jax.experimental import pallas as pl
from jax.experimental.pallas import tpu as pltpu

INPUT_SIZE = 784
HIDDEN_SIZE = 256
OUTPUT_DIM = 10


def _round_up(n, m):
    return ((n + m - 1) // m) * m


def _ffn_kernel(x_ref,
                w1_ref, b1_ref,
                w2_ref, b2_ref,
                w3_ref, b3_ref,
                w4_ref, b4_ref,
                o_ref):
    """Fused 4-layer MLP. Matmuls in the weights' dtype (bf16 by default) with f32
    accumulation; bias-add and sigmoid strictly in f32."""
    mm_dtype = w1_ref.dtype

    x = x_ref[...].astype(mm_dtype)

    h = jnp.dot(x, w1_ref[...], preferred_element_type=jnp.float32) + b1_ref[...]
    h = jax.nn.sigmoid(h)

    h = jnp.dot(h.astype(mm_dtype), w2_ref[...],
                preferred_element_type=jnp.float32) + b2_ref[...]
    h = jax.nn.sigmoid(h)

    h = jnp.dot(h.astype(mm_dtype), w3_ref[...],
                preferred_element_type=jnp.float32) + b3_ref[...]
    h = jax.nn.sigmoid(h)

    out = jnp.dot(h.astype(mm_dtype), w4_ref[...],
                  preferred_element_type=jnp.float32) + b4_ref[...]
    o_ref[...] = out.astype(o_ref.dtype)


@functools.partial(jax.jit, static_argnames=("block_b", "matmul_dtype"))
def feed_forward_net(x, params, *, block_b=256, matmul_dtype=jnp.bfloat16):
    """x: (B, 784) float32.  params: dict of transposed weights / (1, N) biases."""
    B = x.shape[0]

    # Effective batch tile: clamp to the (sublane-rounded) batch so tiny batches don't
    # force a huge padded tile, keep it a multiple of 8 for the (8, 128) layout rule.
    block_b_eff = min(block_b, _round_up(B, 8))
    block_b_eff = _round_up(block_b_eff, 8)
    b_pad = _round_up(B, block_b_eff)

    # Lane-dense shapes: K0 = 896 (7*128) input features, N_out = 128 output lanes.
    in_pad = _round_up(INPUT_SIZE, 128)     # 896
    out_pad = _round_up(OUTPUT_DIM, 128)    # 128

    # Pad batch + feature dims of x (zeros are harmless: padded rows are discarded,
    # padded feature columns hit zero weight rows).
    xp = jnp.pad(x, ((0, b_pad - B), (0, in_pad - INPUT_SIZE)))

    # Weights: pre-pad + cast to the matmul dtype (halves weight DMA in bf16).
    w1 = jnp.pad(params["w1"], ((0, in_pad - INPUT_SIZE), (0, 0))).astype(matmul_dtype)
    w2 = params["w2"].astype(matmul_dtype)
    w3 = params["w3"].astype(matmul_dtype)
    w4 = jnp.pad(params["w4"], ((0, 0), (0, out_pad - OUTPUT_DIM))).astype(matmul_dtype)
    # Biases stay f32 (added post-accumulation).
    b1 = params["b1"].astype(jnp.float32)
    b2 = params["b2"].astype(jnp.float32)
    b3 = params["b3"].astype(jnp.float32)
    b4 = jnp.pad(params["b4"], ((0, 0), (0, out_pad - OUTPUT_DIM))).astype(jnp.float32)

    grid = (b_pad // block_b_eff,)

    # Weights/biases are small (<1 MiB in bf16): keep each as one full VMEM block with a
    # constant index_map, so they are DMA'd once and stay resident across the batch grid.
    def full(arr):
        return pl.BlockSpec(arr.shape, lambda i: (0, 0))

    out_padded = pl.pallas_call(
        _ffn_kernel,
        out_shape=jax.ShapeDtypeStruct((b_pad, out_pad), jnp.float32),
        grid=grid,
        in_specs=[
            pl.BlockSpec((block_b_eff, in_pad), lambda i: (i, 0)),
            full(w1), full(b1),
            full(w2), full(b2),
            full(w3), full(b3),
            full(w4), full(b4),
        ],
        out_specs=pl.BlockSpec((block_b_eff, out_pad), lambda i: (i, 0)),
        compiler_params=pltpu.CompilerParams(
            dimension_semantics=("parallel",),
        ),
    )(xp, w1, b1, w2, b2, w3, b3, w4, b4)

    # Drop batch padding and the lane padding of the 10-wide logits (cheap XLA slice).
    return out_padded[:B, :OUTPUT_DIM]


def init_params(key):
    """Deterministic init mirroring nn.Linear's U(-1/sqrt(fan_in), 1/sqrt(fan_in)).
    Weights are stored transposed: (in_features, out_features); biases as (1, out)."""
    dims = [(INPUT_SIZE, HIDDEN_SIZE),
            (HIDDEN_SIZE, HIDDEN_SIZE),
            (HIDDEN_SIZE, HIDDEN_SIZE),
            (HIDDEN_SIZE, OUTPUT_DIM)]
    params = {}
    for idx, (fan_in, fan_out) in enumerate(dims, start=1):
        key, kw, kb = jax.random.split(key, 3)
        bound = 1.0 / jnp.sqrt(fan_in)
        params[f"w{idx}"] = jax.random.uniform(
            kw, (fan_in, fan_out), jnp.float32, -bound, bound)
        params[f"b{idx}"] = jax.random.uniform(
            kb, (1, fan_out), jnp.float32, -bound, bound)
    return params


def feed_forward_net_ref(x, params, matmul_dtype=jnp.float32):
    """Pure-JAX reference. matmul_dtype lets us match the kernel's bf16 MXU operands."""
    def dot(a, w):
        return jnp.dot(a.astype(matmul_dtype), w.astype(matmul_dtype),
                       preferred_element_type=jnp.float32)
    h = jax.nn.sigmoid(dot(x, params["w1"]) + params["b1"])
    h = jax.nn.sigmoid(dot(h, params["w2"]) + params["b2"])
    h = jax.nn.sigmoid(dot(h, params["w3"]) + params["b3"])
    return dot(h, params["w4"]) + params["b4"]


if __name__ == "__main__":
    key = jax.random.PRNGKey(0)
    key, kx = jax.random.split(key)

    batch = 8  # small batch consistent with flattened-MNIST MLP input
    x = jax.random.normal(kx, (batch, INPUT_SIZE), jnp.float32)

    params = init_params(key)

    out = feed_forward_net(x, params)           # bf16 MXU operands, f32 accumulation
    out = jax.block_until_ready(out)
    assert out.shape == (batch, OUTPUT_DIM)

    # Tight check against a reference using the same bf16-operand matmuls.
    ref_bf16 = feed_forward_net_ref(x, params, matmul_dtype=jnp.bfloat16)
    assert jnp.allclose(out, ref_bf16, atol=5e-3, rtol=5e-3), "mismatch vs bf16 reference"

    # Loose sanity check against the full-f32 reference (bf16 operand rounding ~1e-3).
    ref_f32 = feed_forward_net_ref(x, params, matmul_dtype=jnp.float32)
    assert jnp.allclose(out, ref_f32, atol=5e-2, rtol=5e-2), "mismatch vs f32 reference"

    print("KERNEL_OK")
</pallas_src>

<mosaic_0001>
module attributes {stable_mosaic.version = 11 : i64} {
  func.func @_ffn_kernel(%arg0: i32, %arg1: memref<8x896xf32, #tpu.memory_space<vmem>>, %arg2: memref<896x256xbf16, #tpu.memory_space<vmem>>, %arg3: memref<1x256xf32, #tpu.memory_space<vmem>>, %arg4: memref<256x256xbf16, #tpu.memory_space<vmem>>, %arg5: memref<1x256xf32, #tpu.memory_space<vmem>>, %arg6: memref<256x256xbf16, #tpu.memory_space<vmem>>, %arg7: memref<1x256xf32, #tpu.memory_space<vmem>>, %arg8: memref<256x128xbf16, #tpu.memory_space<vmem>>, %arg9: memref<1x128xf32, #tpu.memory_space<vmem>>, %arg10: memref<8x128xf32, #tpu.memory_space<vmem>>) attributes {dimension_semantics = [#tpu.dimension_semantics<parallel>], iteration_bounds = array<i64: 1>, scalar_prefetch = 0 : i64, scratch_operands = 0 : i64, tpu.core_type = #tpu.core_type<tc>, window_params = [{transform_indices = @transform_0, window_bounds = array<i64: 8, 896>}, {pipeline_mode = #tpu.pipeline_mode<synchronous>, transform_indices = @transform_1, window_bounds = array<i64: 896, 256>}, {pipeline_mode = #tpu.pipeline_mode<synchronous>, transform_indices = @transform_2, window_bounds = array<i64: 1, 256>}, {pipeline_mode = #tpu.pipeline_mode<synchronous>, transform_indices = @transform_3, window_bounds = array<i64: 256, 256>}, {pipeline_mode = #tpu.pipeline_mode<synchronous>, transform_indices = @transform_4, window_bounds = array<i64: 1, 256>}, {pipeline_mode = #tpu.pipeline_mode<synchronous>, transform_indices = @transform_5, window_bounds = array<i64: 256, 256>}, {pipeline_mode = #tpu.pipeline_mode<synchronous>, transform_indices = @transform_6, window_bounds = array<i64: 1, 256>}, {pipeline_mode = #tpu.pipeline_mode<synchronous>, transform_indices = @transform_7, window_bounds = array<i64: 256, 128>}, {pipeline_mode = #tpu.pipeline_mode<synchronous>, transform_indices = @transform_8, window_bounds = array<i64: 1, 128>}, {transform_indices = @transform_9, window_bounds = array<i64: 8, 128>}]} {
    %c0 = arith.constant 0 : index
    %c0_0 = arith.constant 0 : index
    %0 = vector.load %arg1[%c0, %c0_0] : memref<8x896xf32, #tpu.memory_space<vmem>>, vector<8x896xf32>
    %1 = arith.truncf %0 : vector<8x896xf32> to vector<8x896xbf16>
    %c0_1 = arith.constant 0 : index
    %c0_2 = arith.constant 0 : index
    %2 = vector.load %arg2[%c0_1, %c0_2] : memref<896x256xbf16, #tpu.memory_space<vmem>>, vector<896x256xbf16>
    %cst = arith.constant dense<0.000000e+00> : vector<8x256xf32>
    %3 = tpu.matmul %1, %2, %cst {dimension_numbers = #tpu.dot_dimension_numbers<[1], [0], [0], [1], [0, 0, 1, 1], [], []>} : vector<8x896xbf16>, vector<896x256xbf16>, vector<8x256xf32> -> vector<8x256xf32>
    %c0_3 = arith.constant 0 : index
    %c0_4 = arith.constant 0 : index
    %4 = vector.load %arg3[%c0_3, %c0_4] : memref<1x256xf32, #tpu.memory_space<vmem>>, vector<1x256xf32>
    %5 = vector.broadcast %4 : vector<1x256xf32> to vector<8x256xf32>
    %6 = arith.addf %3, %5 : vector<8x256xf32>
    %7 = arith.negf %6 : vector<8x256xf32>
    %8 = math.exp %7 : vector<8x256xf32>
    %cst_5 = arith.constant 1.000000e+00 : f32
    %9 = vector.broadcast %cst_5 : f32 to vector<8x256xf32>
    %10 = arith.addf %9, %8 : vector<8x256xf32>
    %11 = arith.divf %9, %10 : vector<8x256xf32>
    %12 = arith.truncf %11 : vector<8x256xf32> to vector<8x256xbf16>
    %c0_6 = arith.constant 0 : index
    %c0_7 = arith.constant 0 : index
    %13 = vector.load %arg4[%c0_6, %c0_7] : memref<256x256xbf16, #tpu.memory_space<vmem>>, vector<256x256xbf16>
    %cst_8 = arith.constant dense<0.000000e+00> : vector<8x256xf32>
    %14 = tpu.matmul %12, %13, %cst_8 {dimension_numbers = #tpu.dot_dimension_numbers<[1], [0], [0], [1], [0, 0, 1, 1], [], []>} : vector<8x256xbf16>, vector<256x256xbf16>, vector<8x256xf32> -> vector<8x256xf32>
    %c0_9 = arith.constant 0 : index
    %c0_10 = arith.constant 0 : index
    %15 = vector.load %arg5[%c0_9, %c0_10] : memref<1x256xf32, #tpu.memory_space<vmem>>, vector<1x256xf32>
    %16 = vector.broadcast %15 : vector<1x256xf32> to vector<8x256xf32>
    %17 = arith.addf %14, %16 : vector<8x256xf32>
    %18 = arith.negf %17 : vector<8x256xf32>
    %19 = math.exp %18 : vector<8x256xf32>
    %cst_11 = arith.constant 1.000000e+00 : f32
    %20 = vector.broadcast %cst_11 : f32 to vector<8x256xf32>
    %21 = arith.addf %20, %19 : vector<8x256xf32>
    %22 = arith.divf %20, %21 : vector<8x256xf32>
    %23 = arith.truncf %22 : vector<8x256xf32> to vector<8x256xbf16>
    %c0_12 = arith.constant 0 : index
    %c0_13 = arith.constant 0 : index
    %24 = vector.load %arg6[%c0_12, %c0_13] : memref<256x256xbf16, #tpu.memory_space<vmem>>, vector<256x256xbf16>
    %cst_14 = arith.constant dense<0.000000e+00> : vector<8x256xf32>
    %25 = tpu.matmul %23, %24, %cst_14 {dimension_numbers = #tpu.dot_dimension_numbers<[1], [0], [0], [1], [0, 0, 1, 1], [], []>} : vector<8x256xbf16>, vector<256x256xbf16>, vector<8x256xf32> -> vector<8x256xf32>
    %c0_15 = arith.constant 0 : index
    %c0_16 = arith.constant 0 : index
    %26 = vector.load %arg7[%c0_15, %c0_16] : memref<1x256xf32, #tpu.memory_space<vmem>>, vector<1x256xf32>
    %27 = vector.broadcast %26 : vector<1x256xf32> to vector<8x256xf32>
    %28 = arith.addf %25, %27 : vector<8x256xf32>
    %29 = arith.negf %28 : vector<8x256xf32>
    %30 = math.exp %29 : vector<8x256xf32>
    %cst_17 = arith.constant 1.000000e+00 : f32
    %31 = vector.broadcast %cst_17 : f32 to vector<8x256xf32>
    %32 = arith.addf %31, %30 : vector<8x256xf32>
    %33 = arith.divf %31, %32 : vector<8x256xf32>
    %34 = arith.truncf %33 : vector<8x256xf32> to vector<8x256xbf16>
    %c0_18 = arith.constant 0 : index
    %c0_19 = arith.constant 0 : index
    %35 = vector.load %arg8[%c0_18, %c0_19] : memref<256x128xbf16, #tpu.memory_space<vmem>>, vector<256x128xbf16>
    %cst_20 = arith.constant dense<0.000000e+00> : vector<8x128xf32>
    %36 = tpu.matmul %34, %35, %cst_20 {dimension_numbers = #tpu.dot_dimension_numbers<[1], [0], [0], [1], [0, 0, 1, 1], [], []>} : vector<8x256xbf16>, vector<256x128xbf16>, vector<8x128xf32> -> vector<8x128xf32>
    %c0_21 = arith.constant 0 : index
    %c0_22 = arith.constant 0 : index
    %37 = vector.load %arg9[%c0_21, %c0_22] : memref<1x128xf32, #tpu.memory_space<vmem>>, vector<1x128xf32>
    %38 = vector.broadcast %37 : vector<1x128xf32> to vector<8x128xf32>
    %39 = arith.addf %36, %38 : vector<8x128xf32>
    %c0_23 = arith.constant 0 : index
    %c0_24 = arith.constant 0 : index
    %40 = vector.load %arg10[%c0_23, %c0_24] : memref<8x128xf32, #tpu.memory_space<vmem>>, vector<8x128xf32>
    tpu.vector_store %arg10[%c0_23, %c0_24], %39 {strides = array<i32>} : memref<8x128xf32, #tpu.memory_space<vmem>>, vector<8x128xf32>,
    return
  }
  func.func @transform_0(%arg0: i32) -> (i32, i32) {
    %c0_i32 = arith.constant 0 : i32
    %c0_i32_0 = arith.constant 0 : i32
    return %arg0, %c0_i32 : i32, i32
  }
  func.func @transform_1(%arg0: i32) -> (i32, i32) {
    %c0_i32 = arith.constant 0 : i32
    %c0_i32_0 = arith.constant 0 : i32
    %c0_i32_1 = arith.constant 0 : i32
    return %c0_i32, %c0_i32_0 : i32, i32
  }
  func.func @transform_2(%arg0: i32) -> (i32, i32) {
    %c0_i32 = arith.constant 0 : i32
    %c0_i32_0 = arith.constant 0 : i32
    %c0_i32_1 = arith.constant 0 : i32
    return %c0_i32, %c0_i32_0 : i32, i32
  }
  func.func @transform_3(%arg0: i32) -> (i32, i32) {
    %c0_i32 = arith.constant 0 : i32
    %c0_i32_0 = arith.constant 0 : i32
    %c0_i32_1 = arith.constant 0 : i32
    return %c0_i32, %c0_i32_0 : i32, i32
  }
  func.func @transform_4(%arg0: i32) -> (i32, i32) {
    %c0_i32 = arith.constant 0 : i32
    %c0_i32_0 = arith.constant 0 : i32
    %c0_i32_1 = arith.constant 0 : i32
    return %c0_i32, %c0_i32_0 : i32, i32
  }
  func.func @transform_5(%arg0: i32) -> (i32, i32) {
    %c0_i32 = arith.constant 0 : i32
    %c0_i32_0 = arith.constant 0 : i32
    %c0_i32_1 = arith.constant 0 : i32
    return %c0_i32, %c0_i32_0 : i32, i32
  }
  func.func @transform_6(%arg0: i32) -> (i32, i32) {
    %c0_i32 = arith.constant 0 : i32
    %c0_i32_0 = arith.constant 0 : i32
    %c0_i32_1 = arith.constant 0 : i32
    return %c0_i32, %c0_i32_0 : i32, i32
  }
  func.func @transform_7(%arg0: i32) -> (i32, i32) {
    %c0_i32 = arith.constant 0 : i32
    %c0_i32_0 = arith.constant 0 : i32
    %c0_i32_1 = arith.constant 0 : i32
    return %c0_i32, %c0_i32_0 : i32, i32
  }
  func.func @transform_8(%arg0: i32) -> (i32, i32) {
    %c0_i32 = arith.constant 0 : i32
    %c0_i32_0 = arith.constant 0 : i32
    %c0_i32_1 = arith.constant 0 : i32
    return %c0_i32, %c0_i32_0 : i32, i32
  }
  func.func @transform_9(%arg0: i32) -> (i32, i32) {
    %c0_i32 = arith.constant 0 : i32
    %c0_i32_0 = arith.constant 0 : i32
    return %arg0, %c0_i32 : i32, i32
  }
}

</mosaic_0001>

<bundles_post_ra>
// kernel: feed_forward_net.1
= control target key start
LH: loop header
LB: loop body
LE: loop exit
PB: predicated region body
PF: predicated region fallthrough
CT: control target
= control target key end

     0   :  { %s3949_s0 = inlined_call_operand.vmem [shape: f32[8,896], index: 0, kind: input, shape index: {}]   ;;  %s3950_s1 = inlined_call_operand.vmem [shape: bf16[896,256], index: 1, kind: input, shape index: {}]   ;;  %s3951_s2 = inlined_call_operand.vmem [shape: f32[1,256], index: 2, kind: input, shape index: {}]   ;;  %s3952_s3 = inlined_call_operand.vmem [shape: bf16[256,256], index: 3, kind: input, shape index: {}]   ;;  %s3953_s4 = inlined_call_operand.vmem [shape: f32[1,256], index: 4, kind: input, shape index: {}]   ;;  %s3954_s5 = inlined_call_operand.vmem [shape: bf16[256,256], index: 5, kind: input, shape index: {}]   ;;  %s3955_s6 = inlined_call_operand.vmem [shape: f32[1,256], index: 6, kind: input, shape index: {}]   ;;  %s3956_s7 = inlined_call_operand.vmem [shape: bf16[256,128], index: 7, kind: input, shape index: {}]   ;;  %s3957_s8 = inlined_call_operand.vmem [shape: f32[1,128], index: 8, kind: input, shape index: {}]   ;;  %s3958_s9 = inlined_call_operand.hbm [shape: f32[8,128], index: 9, kind: output, shape index: {}]  }
   0x1   :  { %v1760_v0 = vld [vmem:[%s3950_s1 + $0x70] sm:$0xf]  ;;  %v2491_v1 = vld [vmem:[%s3950_s1 + $0x74] sm:$0xf0]  ;;  %v1752_v9 = vld [vmem:[%s3950_s1 + $0x60] sm:$0xf] }
   0x2   :  { %v1824_v2 = vld [vmem:[%s3950_s1 + $0xf0] sm:$0xf]  ;;  %v1761_v3 = vor.u32 %v2491_v1, %v1760_v0  ;;  %v2507_v4 = vld [vmem:[%s3950_s1 + $0xf4] sm:$0xf0]  ;;  %v2489_v10 = vld [vmem:[%s3950_s1 + $0x64] sm:$0xf0] }
   0x3   :  { %v1888_v5 = vld [vmem:[%s3950_s1 + $0x170] sm:$0xf]  ;;  %v2523_v6 = vld [vmem:[%s3950_s1 + $0x174] sm:$0xf0]  ;;  %v1825_v7 = vor.u32 %v2507_v4, %v1824_v2  ;;  %v1816_v11 = vld [vmem:[%s3950_s1 + $0xe0] sm:$0xf]  ;;  %v1753_v12 = vor.u32 %v2489_v10, %v1752_v9 }
   0x4   :  { %v1889_v8 = vor.u32 %v2523_v6, %v1888_v5  ;;  %725 = vmatpush.bf16.msra.mxu0 %v1761_v3  ;;  %v2505_v13 = vld [vmem:[%s3950_s1 + $0xe4] sm:$0xf0]  ;;  %v1880_v14 = vld [vmem:[%s3950_s1 + $0x160] sm:$0xf]  ;;  %v1744_v18 = vld [vmem:[%s3950_s1 + $0x50] sm:$0xf] }
   0x5   :  { %v2521_v15 = vld [vmem:[%s3950_s1 + $0x164] sm:$0xf0]  ;;  %738 = vmatpush.bf16.msra.mxu1 %v1825_v7  ;;  %v1817_v16 = vor.u32 %v2505_v13, %v1816_v11  ;;  %v2487_v19 = vld [vmem:[%s3950_s1 + $0x54] sm:$0xf0]  ;;  %v1808_v20 = vld [vmem:[%s3950_s1 + $0xd0] sm:$0xf] }
   0x6   :  { %751 = vmatpush.bf16.msra.mxu2 %v1889_v8  ;;  %v1881_v17 = vor.u32 %v2521_v15, %v1880_v14  ;;  %v2503_v21 = vld [vmem:[%s3950_s1 + $0xd4] sm:$0xf0]  ;;  %v1872_v22 = vld [vmem:[%s3950_s1 + $0x150] sm:$0xf]  ;;  %v1745_v24 = vor.u32 %v2487_v19, %v1744_v18  ;;  %v1736_v25 = vld [vmem:[%s3950_s1 + $0x40] sm:$0xf] }
   0x7   :  { %v2519_v23 = vld [vmem:[%s3950_s1 + $0x154] sm:$0xf0]  ;;  %v2485_v26 = vld [vmem:[%s3950_s1 + $0x44] sm:$0xf0]  ;;  %v1809_v27 = vor.u32 %v2503_v21, %v1808_v20  ;;  %v1800_v29 = vld [vmem:[%s3950_s1 + $0xc0] sm:$0xf] }
   0x8   :  { %726 = vmatpush.bf16.msra.mxu0 %v1753_v12  ;;  %v1873_v28 = vor.u32 %v2519_v23, %v1872_v22  ;;  %v1952_v30 = vld [vmem:[%s3950_s1 + $0x1f0] sm:$0xf]  ;;  %v2539_v31 = vld [vmem:[%s3950_s1 + $0x1f4] sm:$0xf0]  ;;  %v2501_v32 = vld [vmem:[%s3950_s1 + $0xc4] sm:$0xf0]  ;;  %v1737_v37 = vor.u32 %v2485_v26, %v1736_v25 }
   0x9   :  { %739 = vmatpush.bf16.msra.mxu1 %v1817_v16  ;;  %v1864_v33 = vld [vmem:[%s3950_s1 + $0x140] sm:$0xf]  ;;  %v2517_v34 = vld [vmem:[%s3950_s1 + $0x144] sm:$0xf0]  ;;  %v1953_v35 = vor.u32 %v2539_v31, %v1952_v30  ;;  %v1728_v38 = vld [vmem:[%s3950_s1 + $0x30] sm:$0xf]  ;;  %v1801_v41 = vor.u32 %v2501_v32, %v1800_v29 }
   0xa   :  { %752 = vmatpush.bf16.msra.mxu2 %v1881_v17  ;;  %v1944_v36 = vld [vmem:[%s3950_s1 + $0x1e0] sm:$0xf]  ;;  %v2483_v39 = vld [vmem:[%s3950_s1 + $0x34] sm:$0xf0]  ;;  %v2537_v40 = vld [vmem:[%s3950_s1 + $0x1e4] sm:$0xf0]  ;;  %v1865_v42 = vor.u32 %v2517_v34, %v1864_v33 }
   0xb   :  { %764 = vmatpush.bf16.msra.mxu3 %v1953_v35  ;;  %v1792_v43 = vld [vmem:[%s3950_s1 + $0xb0] sm:$0xf]  ;;  %v2499_v44 = vld [vmem:[%s3950_s1 + $0xb4] sm:$0xf0]  ;;  %v1945_v46 = vor.u32 %v2537_v40, %v1944_v36  ;;  %v1729_v50 = vor.u32 %v2483_v39, %v1728_v38  ;;  %v1720_v51 = vld [vmem:[%s3950_s1 + $0x20] sm:$0xf] }
   0xc   :  { %727 = vmatpush.bf16.msra.mxu0 %v1745_v24  ;;  %v1856_v45 = vld [vmem:[%s3950_s1 + $0x130] sm:$0xf]  ;;  %v2515_v47 = vld [vmem:[%s3950_s1 + $0x134] sm:$0xf0]  ;;  %v2481_v52 = vld [vmem:[%s3950_s1 + $0x24] sm:$0xf0]  ;;  %v1793_v54 = vor.u32 %v2499_v44, %v1792_v43 }
   0xd   :  { %740 = vmatpush.bf16.msra.mxu1 %v1809_v27  ;;  %v1936_v48 = vld [vmem:[%s3950_s1 + $0x1d0] sm:$0xf]  ;;  %v2535_v49 = vld [vmem:[%s3950_s1 + $0x1d4] sm:$0xf0]  ;;  %v1857_v55 = vor.u32 %v2515_v47, %v1856_v45  ;;  %v1784_v56 = vld [vmem:[%s3950_s1 + $0xa0] sm:$0xf]  ;;  %v1721_v62 = vor.u32 %v2481_v52, %v1720_v51 }
   0xe   :  { %753 = vmatpush.bf16.msra.mxu2 %v1873_v28  ;;  %v1937_v53 = vor.u32 %v2535_v49, %v1936_v48  ;;  %v1928_v57 = vld [vmem:[%s3950_s1 + $0x1c0] sm:$0xf]  ;;  %v2533_v58 = vld [vmem:[%s3950_s1 + $0x1c4] sm:$0xf0]  ;;  %v1712_v63 = vld [vmem:[%s3950_s1 + $0x10] sm:$0xf] }
   0xf   :  { %765 = vmatpush.bf16.msra.mxu3 %v1945_v46  ;;  %v2497_v59 = vld [vmem:[%s3950_s1 + $0xa4] sm:$0xf0]  ;;  %v1848_v60 = vld [vmem:[%s3950_s1 + $0x120] sm:$0xf]  ;;  %v2479_v0 = vld [vmem:[%s3950_s1 + $0x14] sm:$0xf0]  ;;  %v1929_v1 = vor.u32 %v2533_v58, %v1928_v57 }
  0x10   :  { %728 = vmatpush.bf16.msra.mxu0 %v1737_v37  ;;  %v2513_v61 = vld [vmem:[%s3950_s1 + $0x124] sm:$0xf0]  ;;  %v1785_v2 = vor.u32 %v2497_v59, %v1784_v56  ;;  %v1776_v4 = vld [vmem:[%s3950_s1 + $0x90] sm:$0xf]  ;;  %v2531_v6 = vld [vmem:[%s3950_s1 + $0x1b4] sm:$0xf0]  ;;  %v1713_v10 = vor.u32 %v2479_v0, %v1712_v63 }
  0x11   :  { %741 = vmatpush.bf16.msra.mxu1 %v1801_v41  ;;  %v1849_v3 = vor.u32 %v2513_v61, %v1848_v60  ;;  %v1920_v5 = vld [vmem:[%s3950_s1 + $0x1b0] sm:$0xf]  ;;  %v2495_v7 = vld [vmem:[%s3950_s1 + $0x94] sm:$0xf0]  ;;  %v1704_v11 = vld [vmem:[%s3950_s1] sm:$0xf] }
  0x12   :  { %754 = vmatpush.bf16.msra.mxu2 %v1865_v42  ;;  %v1840_v8 = vld [vmem:[%s3950_s1 + $0x110] sm:$0xf]  ;;  %v2511_v9 = vld [vmem:[%s3950_s1 + $0x114] sm:$0xf0]  ;;  %v2477_v12 = vld [vmem:[%s3950_s1 + $0x4] sm:$0xf0]  ;;  %v1921_v14 = vor.u32 %v2531_v6, %v1920_v5  ;;  %v1777_v15 = vor.u32 %v2495_v7, %v1776_v4 }
  0x13   :  { %766 = vmatpush.bf16.msra.mxu3 %v1937_v53  ;;  %v1768_v13 = vld [vmem:[%s3950_s1 + $0x80] sm:$0xf]  ;;  %v1841_v16 = vor.u32 %v2511_v9, %v1840_v8  ;;  %v2493_v17 = vld [vmem:[%s3950_s1 + $0x84] sm:$0xf0]  ;;  %v2016_v22 = vld [vmem:[%s3950_s1 + $0x270] sm:$0xf]  ;;  %v1705_v26 = vor.u32 %v2477_v12, %v1704_v11 }
  0x14   :  { %729 = vmatpush.bf16.msra.mxu0 %v1729_v50  ;;  %v1912_v18 = vld [vmem:[%s3950_s1 + $0x1a0] sm:$0xf]  ;;  %v2529_v19 = vld [vmem:[%s3950_s1 + $0x1a4] sm:$0xf0]  ;;  %v2555_v23 = vld [vmem:[%s3950_s1 + $0x274] sm:$0xf0]  ;;  %v1769_v30 = vor.u32 %v2493_v17, %v1768_v13 }
  0x15   :  { %742 = vmatpush.bf16.msra.mxu1 %v1793_v54  ;;  %v1832_v20 = vld [vmem:[%s3950_s1 + $0x100] sm:$0xf]  ;;  %v2509_v21 = vld [vmem:[%s3950_s1 + $0x104] sm:$0xf0]  ;;  %v2080_v24 = vld [vmem:[%s3950_s1 + $0x2f0] sm:$0xf]  ;;  %v1913_v29 = vor.u32 %v2529_v19, %v1912_v18  ;;  %v2017_v34 = vor.u32 %v2555_v23, %v2016_v22 }
  0x16   :  { %755 = vmatpush.bf16.msra.mxu2 %v1857_v55  ;;  %v2571_v25 = vld [vmem:[%s3950_s1 + $0x2f4] sm:$0xf0]  ;;  %v2144_v27 = vld [vmem:[%s3950_s1 + $0x370] sm:$0xf]  ;;  %v1833_v31 = vor.u32 %v2509_v21, %v1832_v20  ;;  %v2008_v36 = vld [vmem:[%s3950_s1 + $0x260] sm:$0xf] }
  0x17   :  { %767 = vmatpush.bf16.msra.mxu3 %v1929_v1  ;;  %v2587_v28 = vld [vmem:[%s3950_s1 + $0x374] sm:$0xf0]  ;;  %v1904_v32 = vld [vmem:[%s3950_s1 + $0x190] sm:$0xf]  ;;  %v2081_v35 = vor.u32 %v2571_v25, %v2080_v24  ;;  %v2553_v37 = vld [vmem:[%s3950_s1 + $0x264] sm:$0xf0] }
  0x18   :  { %730 = vmatpush.bf16.msra.mxu0 %v1721_v62  ;;  %v2527_v33 = vld [vmem:[%s3950_s1 + $0x194] sm:$0xf0]  ;;  %v2145_v38 = vor.u32 %v2587_v28, %v2144_v27  ;;  %v2072_v39 = vld [vmem:[%s3950_s1 + $0x2e0] sm:$0xf]  ;;  %v2569_v40 = vld [vmem:[%s3950_s1 + $0x2e4] sm:$0xf0]  ;;  %v2009_v50 = vor.u32 %v2553_v37, %v2008_v36 }
  0x19   :  { %743 = vmatpush.bf16.msra.mxu1 %v1785_v2  ;;  %v35_v41 = vld [vmem:[%s3949_s0 + $0x10] sm:$0xff]  ;;  %v2136_v42 = vld [vmem:[%s3950_s1 + $0x360] sm:$0xf]  ;;  %v2585_v43 = vld [vmem:[%s3950_s1 + $0x364] sm:$0xf0]  ;;  %v1905_v44 = vor.u32 %v2527_v33, %v1904_v32  ;;  %v2073_v51 = vor.u32 %v2569_v40, %v2072_v39 }
  0x1a   :  { %756 = vmatpush.bf16.msra.mxu2 %v1849_v3  ;;  %v2996_v45 = vpack.c.bf16 %v35_v41, %v35_v41  ;;  %v2000_v46 = vld [vmem:[%s3950_s1 + $0x250] sm:$0xf]  ;;  %v1896_v47 = vld [vmem:[%s3950_s1 + $0x180] sm:$0xf]  ;;  %v2525_v48 = vld [vmem:[%s3950_s1 + $0x184] sm:$0xf0]  ;;  %v2137_v56 = vor.u32 %v2585_v43, %v2136_v42 }
  0x1b   :  { %768 = vmatpush.bf16.msra.mxu3 %v1921_v14  ;;  %v33_v49 = vld [vmem:[%s3949_s0] sm:$0xff]  ;;  %v2490_v52 = vld [vmem:[%s3950_s1 + $0x74] sm:$0xf]  ;;  %v1762_v53 = vld [vmem:[%s3950_s1 + $0x78] sm:$0xf0]  ;;  %v1897_v63 = vor.u32 %v2525_v48, %v1896_v47 }
  0x1c   :  { %731 = vmatpush.bf16.msra.mxu0 %v1713_v10  ;;  %v3016_v54 = vpack.c.bf16 %v33_v49, %v33_v49  ;;  %v34_v55 = vld [vmem:[%s3949_s0 + $0x8] sm:$0xff]  ;;  %v2551_v57 = vld [vmem:[%s3950_s1 + $0x254] sm:$0xf0]  ;;  %v2064_v58 = vld [vmem:[%s3950_s1 + $0x2d0] sm:$0xf]  ;;  %v1765_v1 = vor.u32 %v2490_v52, %v1762_v53 }
  0x1d   :  { %744 = vmatpush.bf16.msra.mxu1 %v1777_v15  ;;  %v2567_v59 = vld [vmem:[%s3950_s1 + $0x2d4] sm:$0xf0]  ;;  %v3030_v60 = vpack.c.bf16 %v34_v55, %v34_v55  ;;  %v2128_v61 = vld [vmem:[%s3950_s1 + $0x350] sm:$0xf]  ;;  %v1992_v0 = vld [vmem:[%s3950_s1 + $0x240] sm:$0xf]  ;;  %v2001_v2 = vor.u32 %v2551_v57, %v2000_v46 }
  0x1e   :  { %757 = vmatpush.bf16.msra.mxu2 %v1841_v16  ;;  %v2583_v62 = vld [vmem:[%s3950_s1 + $0x354] sm:$0xf0]  ;;  %v2065_v3 = vor.u32 %v2567_v59, %v2064_v58  ;;  %v2549_v4 = vld [vmem:[%s3950_s1 + $0x244] sm:$0xf0]  ;;  %v2488_v5 = vld [vmem:[%s3950_s1 + $0x64] sm:$0xf] }
  0x1f   :  { %769 = vmatpush.bf16.msra.mxu3 %v1913_v29  ;;  %v1754_v6 = vld [vmem:[%s3950_s1 + $0x68] sm:$0xf0]  ;;  %v2129_v7 = vor.u32 %v2583_v62, %v2128_v61  ;;  %v2056_v8 = vld [vmem:[%s3950_s1 + $0x2c0] sm:$0xf]  ;;  %v2565_v9 = vld [vmem:[%s3950_s1 + $0x2c4] sm:$0xf0]  ;;  %v1993_v15 = vor.u32 %v2549_v4, %v1992_v0 }
  0x20   :  { %732 = vmatpush.bf16.msra.mxu0 %v1705_v26  ;;  %v36_v10 = vld [vmem:[%s3949_s0 + $0x18] sm:$0xff]  ;;  %v2120_v11 = vld [vmem:[%s3950_s1 + $0x340] sm:$0xf]  ;;  %v2581_v12 = vld [vmem:[%s3950_s1 + $0x344] sm:$0xf0]  ;;  %v1757_v14 = vor.u32 %v2488_v5, %v1754_v6  ;;  %v2057_v16 = vor.u32 %v2565_v9, %v2056_v8 }
  0x21   :  { %745 = vmatpush.bf16.msra.mxu1 %v1769_v30  ;;  %v3068_v13 = vpack.c.bf16 %v36_v10, %v36_v10  ;;  %v1984_v17 = vld [vmem:[%s3950_s1 + $0x230] sm:$0xf]  ;;  %v2486_v18 = vld [vmem:[%s3950_s1 + $0x54] sm:$0xf]  ;;  %v1746_v19 = vld [vmem:[%s3950_s1 + $0x58] sm:$0xf0]  ;;  %v2121_v20 = vor.u32 %v2581_v12, %v2120_v11 }
  0x22   :  { %758 = vmatpush.bf16.msra.mxu2 %v1833_v31  ;;  %v2547_v21 = vld [vmem:[%s3950_s1 + $0x234] sm:$0xf0]  ;;  %v2048_v22 = vld [vmem:[%s3950_s1 + $0x2b0] sm:$0xf]  ;;  %v1749_v26 = vor.u32 %v2486_v18, %v1746_v19  ;;  %v1976_v29 = vld [vmem:[%s3950_s1 + $0x220] sm:$0xf] }
  0x23   :  { %770 = vmatpush.bf16.msra.mxu3 %v1905_v44  ;;  %733 = vmatmul.bf16.vlgmr.msra.gmra.mxu0 %v3016_v54  ;;  %v2563_v23 = vld [vmem:[%s3950_s1 + $0x2b4] sm:$0xf0]  ;;  %v2112_v24 = vld [vmem:[%s3950_s1 + $0x330] sm:$0xf]  ;;  %v1985_v27 = vor.u32 %v2547_v21, %v1984_v17  ;;  %v2484_v30 = vld [vmem:[%s3950_s1 + $0x44] sm:$0xf] }
  0x24   :  { %777 = vmatpush.bf16.msrb.mxu0 %v2017_v34  ;;  %746 = vmatmul.bf16.vlgmr.msra.gmra.mxu1 %v3030_v60  ;;  %v2579_v25 = vld [vmem:[%s3950_s1 + $0x334] sm:$0xf0]  ;;  %v2049_v28 = vor.u32 %v2563_v23, %v2048_v22  ;;  %v1738_v31 = vld [vmem:[%s3950_s1 + $0x48] sm:$0xf0]  ;;  %v2545_v33 = vld [vmem:[%s3950_s1 + $0x224] sm:$0xf0] }
  0x25   :  { %790 = vmatpush.bf16.msrb.mxu1 %v2081_v35  ;;  %759 = vmatmul.bf16.vlgmr.msra.gmra.mxu2 %v2996_v45  ;;  %v2113_v32 = vor.u32 %v2579_v25, %v2112_v24  ;;  %v2040_v34 = vld [vmem:[%s3950_s1 + $0x2a0] sm:$0xf]  ;;  %v2561_v35 = vld [vmem:[%s3950_s1 + $0x2a4] sm:$0xf0]  ;;  %v1977_v39 = vor.u32 %v2545_v33, %v1976_v29  ;;  %v1968_v41 = vld [vmem:[%s3950_s1 + $0x210] sm:$0xf] }
  0x26   :  { %803 = vmatpush.bf16.msrb.mxu2 %v2145_v38  ;;  %v2104_v36 = vld [vmem:[%s3950_s1 + $0x320] sm:$0xf]  ;;  %v2577_v37 = vld [vmem:[%s3950_s1 + $0x324] sm:$0xf0]  ;;  %v1741_v38 = vor.u32 %v2484_v30, %v1738_v31  ;;  %v2041_v40 = vor.u32 %v2561_v35, %v2040_v34  ;;  %v2482_v42 = vld [vmem:[%s3950_s1 + $0x34] sm:$0xf] }
  0x27   :  { %771 = vmatpush.bf16.msra.mxu3 %v1897_v63  ;;  %v1730_v43 = vld [vmem:[%s3950_s1 + $0x38] sm:$0xf0]  ;;  %v2105_v44 = vor.u32 %v2577_v37, %v2104_v36  ;;  %v2543_v46 = vld [vmem:[%s3950_s1 + $0x214] sm:$0xf0]  ;;  %v2032_v47 = vld [vmem:[%s3950_s1 + $0x290] sm:$0xf] }
  0x28   :  { %778 = vmatpush.bf16.msrb.mxu0 %v2009_v50  ;;  %v2559_v48 = vld [vmem:[%s3950_s1 + $0x294] sm:$0xf0]  ;;  %v2096_v49 = vld [vmem:[%s3950_s1 + $0x310] sm:$0xf]  ;;  %v2541_v52 = vld [vmem:[%s3950_s1 + $0x204] sm:$0xf0]  ;;  %v1733_v53 = vor.u32 %v2482_v42, %v1730_v43  ;;  %v1969_v55 = vor.u32 %v2543_v46, %v1968_v41 }
  0x29   :  { %791 = vmatpush.bf16.msrb.mxu1 %v2073_v51  ;;  %v2575_v50 = vld [vmem:[%s3950_s1 + $0x314] sm:$0xf0]  ;;  %v1960_v51 = vld [vmem:[%s3950_s1 + $0x200] sm:$0xf]  ;;  %v2480_v58 = vld [vmem:[%s3950_s1 + $0x24] sm:$0xf] }
  0x2a   :  { %804 = vmatpush.bf16.msrb.mxu2 %v2137_v56  ;;  %772 = vmatmul.bf16.vlgmr.msra.gmra.mxu3 %v3068_v13  ;;  %v2033_v56 = vor.u32 %v2559_v48, %v2032_v47  ;;  %v2024_v57 = vld [vmem:[%s3950_s1 + $0x280] sm:$0xf]  ;;  %v1722_v59 = vld [vmem:[%s3950_s1 + $0x28] sm:$0xf0]  ;;  %v2097_v61 = vor.u32 %v2575_v50, %v2096_v49  ;;  %v2557_v62 = vld [vmem:[%s3950_s1 + $0x284] sm:$0xf0]  ;;  %v1961_v8 = vor.u32 %v2541_v52, %v1960_v51 }
  0x2b   :  { %816 = vmatpush.bf16.msrb.mxu3 %v1765_v1  ;;  %v2088_v63 = vld [vmem:[%s3950_s1 + $0x300] sm:$0xf]  ;;  %v2573_v0 = vld [vmem:[%s3950_s1 + $0x304] sm:$0xf0]  ;;  %v2506_v1 = vld [vmem:[%s3950_s1 + $0xf4] sm:$0xf]  ;;  %v1725_v5 = vor.u32 %v2480_v58, %v1722_v59  ;;  %v2025_v9 = vor.u32 %v2557_v62, %v2024_v57 }
  0x2c   :  { %779 = vmatpush.bf16.msrb.mxu0 %v2001_v2  ;;  %v1826_v2 = vld [vmem:[%s3950_s1 + $0xf8] sm:$0xf0]  ;;  %v2538_v6 = vld [vmem:[%s3950_s1 + $0x1f4] sm:$0xf]  ;;  %v37_v10 = vld [vmem:[%s3949_s0 + $0x20] sm:$0xff]  ;;  %v2089_v12 = vor.u32 %v2573_v0, %v2088_v63 }
  0x2d   :  { %792 = vmatpush.bf16.msrb.mxu1 %v2065_v3  ;;  %v2522_v3 = vld [vmem:[%s3950_s1 + $0x174] sm:$0xf]  ;;  %v1890_v4 = vld [vmem:[%s3950_s1 + $0x178] sm:$0xf0]  ;;  %v38_v11 = vld [vmem:[%s3949_s0 + $0x28] sm:$0xff]  ;;  %v3209_v23 = vpack.c.bf16 %v37_v10, %v37_v10 }
  0x2e   :  { %805 = vmatpush.bf16.msrb.mxu2 %v2129_v7  ;;  %v1954_v7 = vld [vmem:[%s3950_s1 + $0x1f8] sm:$0xf0]  ;;  %v1893_v18 = vor.u32 %v2522_v3, %v1890_v4  ;;  %v2504_v19 = vld [vmem:[%s3950_s1 + $0xe4] sm:$0xf]  ;;  %v1882_v24 = vld [vmem:[%s3950_s1 + $0x168] sm:$0xf0]  ;;  %v3214_v25 = vpack.c.bf16 %v38_v11, %v38_v11 }
  0x2f   :  { %817 = vmatpush.bf16.msrb.mxu3 %v1757_v14  ;;  %v1829_v14 = vor.u32 %v2506_v1, %v1826_v2  ;;  %v1714_v17 = vld [vmem:[%s3950_s1 + $0x18] sm:$0xf0]  ;;  %v2520_v21 = vld [vmem:[%s3950_s1 + $0x164] sm:$0xf]  ;;  %v1957_v22 = vor.u32 %v2538_v6, %v1954_v7  ;;  %v2502_v30 = vld [vmem:[%s3950_s1 + $0xd4] sm:$0xf] }
  0x30   :  { %780 = vmatpush.bf16.msrb.mxu0 %v1993_v15  ;;  %v39_v15 = vld [vmem:[%s3949_s0 + $0x30] sm:$0xff]  ;;  %v2476_v33 = vld [vmem:[%s3950_s1 + $0x4] sm:$0xf]  ;;  %v1706_v34 = vld [vmem:[%s3950_s1 + $0x8] sm:$0xf0]  ;;  %v1885_v35 = vor.u32 %v2520_v21, %v1882_v24 }
  0x31   :  { %793 = vmatpush.bf16.msrb.mxu1 %v2057_v16  ;;  %v2478_v16 = vld [vmem:[%s3950_s1 + $0x14] sm:$0xf]  ;;  %v1938_v42 = vld [vmem:[%s3950_s1 + $0x1d8] sm:$0xf0]  ;;  %v1709_v43 = vor.u32 %v2476_v33, %v1706_v34  ;;  %v2500_v46 = vld [vmem:[%s3950_s1 + $0xc4] sm:$0xf] }
  0x32   :  { %806 = vmatpush.bf16.msrb.mxu2 %v2121_v20  ;;  %v1818_v20 = vld [vmem:[%s3950_s1 + $0xe8] sm:$0xf0]  ;;  %v1717_v29 = vor.u32 %v2478_v16, %v1714_v17  ;;  %v2518_v36 = vld [vmem:[%s3950_s1 + $0x154] sm:$0xf]  ;;  %v2516_v50 = vld [vmem:[%s3950_s1 + $0x144] sm:$0xf] }
  0x33   :  { %818 = vmatpush.bf16.msrb.mxu3 %v1749_v26  ;;  %v2536_v26 = vld [vmem:[%s3950_s1 + $0x1e4] sm:$0xf]  ;;  %v1821_v31 = vor.u32 %v2504_v19, %v1818_v20  ;;  %v2554_v37 = vld [vmem:[%s3950_s1 + $0x274] sm:$0xf]  ;;  %v1802_v47 = vld [vmem:[%s3950_s1 + $0xc8] sm:$0xf0] }
  0x34   :  { %781 = vmatpush.bf16.msrb.mxu0 %v1985_v27  ;;  %v1946_v27 = vld [vmem:[%s3950_s1 + $0x1e8] sm:$0xf0]  ;;  %v2534_v41 = vld [vmem:[%s3950_s1 + $0x1d4] sm:$0xf]  ;;  %v2552_v51 = vld [vmem:[%s3950_s1 + $0x264] sm:$0xf]  ;;  %v1805_v59 = vor.u32 %v2500_v46, %v1802_v47 }
  0x35   :  { %794 = vmatpush.bf16.msrb.mxu1 %v2049_v28  ;;  %v3222_v28 = vpack.c.bf16 %v39_v15, %v39_v15  ;;  %v2010_v52 = vld [vmem:[%s3950_s1 + $0x268] sm:$0xf0]  ;;  %v2498_v58 = vld [vmem:[%s3950_s1 + $0xb4] sm:$0xf]  ;;  %v1858_v63 = vld [vmem:[%s3950_s1 + $0x138] sm:$0xf0] }
  0x36   :  { %807 = vmatpush.bf16.msrb.mxu2 %v2113_v32  ;;  %v1810_v32 = vld [vmem:[%s3950_s1 + $0xd8] sm:$0xf0]  ;;  %v1930_v57 = vld [vmem:[%s3950_s1 + $0x1c8] sm:$0xf0]  ;;  %v2514_v62 = vld [vmem:[%s3950_s1 + $0x134] sm:$0xf]  ;;  %v2013_v0 = vor.u32 %v2552_v51, %v2010_v52 }
  0x37   :  { %819 = vmatpush.bf16.msrb.mxu3 %v1741_v38  ;;  %v2018_v38 = vld [vmem:[%s3950_s1 + $0x278] sm:$0xf0]  ;;  %v2550_v2 = vld [vmem:[%s3950_s1 + $0x254] sm:$0xf] }
  0x38   :  { %782 = vmatpush.bf16.msrb.mxu0 %v1977_v39  ;;  %v1949_v39 = vor.u32 %v2536_v26, %v1946_v27  ;;  %v2021_v48 = vor.u32 %v2554_v37, %v2018_v38  ;;  %v2002_v3 = vld [vmem:[%s3950_s1 + $0x258] sm:$0xf0] }
  0x39   :  { %795 = vmatpush.bf16.msrb.mxu1 %v2041_v40  ;;  %v1874_v40 = vld [vmem:[%s3950_s1 + $0x158] sm:$0xf0] }
  0x3a   :  { %808 = vmatpush.bf16.msrb.mxu2 %v2105_v44  ;;  %v1813_v44 = vor.u32 %v2502_v30, %v1810_v32  ;;  %v1877_v49 = vor.u32 %v2518_v36, %v1874_v40  ;;  %v1922_v6 = vld [vmem:[%s3950_s1 + $0x1b8] sm:$0xf0] }
  0x3b   :  { %820 = vmatpush.bf16.msrb.mxu3 %v1733_v53  ;;  %v1941_v53 = vor.u32 %v2534_v41, %v1938_v42 }
  0x3c   :  { %783 = vmatpush.bf16.msrb.mxu0 %v1969_v55  ;;  %v1866_v55 = vld [vmem:[%s3950_s1 + $0x148] sm:$0xf0] }
  0x3d   :  { %796 = vmatpush.bf16.msrb.mxu1 %v2033_v56  ;;  %v2532_v56 = vld [vmem:[%s3950_s1 + $0x1c4] sm:$0xf]  ;;  %v1869_v1 = vor.u32 %v2516_v50, %v1866_v55 }
  0x3e   :  { %809 = vmatpush.bf16.msrb.mxu2 %v2097_v61  ;;  %v1794_v61 = vld [vmem:[%s3950_s1 + $0xb8] sm:$0xf0]  ;;  %v1933_v4 = vor.u32 %v2532_v56, %v1930_v57 }
  0x3f   :  { %821 = vmatpush.bf16.msrb.mxu3 %v1725_v5  ;;  %v2530_v5 = vld [vmem:[%s3950_s1 + $0x1b4] sm:$0xf] }
  0x40   :  { %784 = vmatpush.bf16.msrb.mxu0 %v1961_v8 }
  0x41   :  { %797 = vmatpush.bf16.msrb.mxu1 %v2025_v9 }
  0x42   :  { %810 = vmatpush.bf16.msrb.mxu2 %v2089_v12 }
  0x43   :  { %785 = vmatmul.bf16.vlgmr.msrb.gmra.mxu0 %v3209_v23  ;;  %822 = vmatpush.bf16.msrb.mxu3 %v1717_v29 }
  0x44   :  { %829 = vmatpush.bf16.msra.mxu0 %v1829_v14  ;;  %798 = vmatmul.bf16.vlgmr.msrb.gmra.mxu1 %v3214_v25 }
  0x45   :  { %842 = vmatpush.bf16.msra.mxu1 %v1893_v18  ;;  %811 = vmatmul.bf16.vlgmr.msrb.gmra.mxu2 %v3222_v28 }
  0x46   :  { %855 = vmatpush.bf16.msra.mxu2 %v1957_v22 }
  0x47   :  { %823 = vmatpush.bf16.msrb.mxu3 %v1709_v43 }
  0x48   :  { %830 = vmatpush.bf16.msra.mxu0 %v1821_v31 }
  0x49   :  { %843 = vmatpush.bf16.msra.mxu1 %v1885_v35 }
  0x4a   :  { %856 = vmatpush.bf16.msra.mxu2 %v1949_v39  ;;  %824 = vmatmul.bf16.vlgmr.msrb.gmra.mxu3 %v3016_v54 }
  0x4b   :  { %868 = vmatpush.bf16.msra.mxu3 %v2021_v48 }
  0x4c   :  { %831 = vmatpush.bf16.msra.mxu0 %v1813_v44 }
  0x4d   :  { %844 = vmatpush.bf16.msra.mxu1 %v1877_v49 }
  0x4e   :  { %857 = vmatpush.bf16.msra.mxu2 %v1941_v53 }
  0x4f   :  { %14 = vsyncpa [#allocation3], 0  ;;  %v1797_v7 = vor.u32 %v2498_v58, %v1794_v61  ;;  %869 = vmatpush.bf16.msra.mxu3 %v2013_v0  ;;  %v2496_v8 = vld [vmem:[%s3950_s1 + $0xa4] sm:$0xf]  ;;  %v1786_v9 = vld [vmem:[%s3950_s1 + $0xa8] sm:$0xf0]  ;;  %v2005_v10 = vor.u32 %v2550_v2, %v2002_v3  ;;  %v1861_v11 = vor.u32 %v2514_v62, %v1858_v63  ;;  %v1925_v15 = vor.u32 %v2530_v5, %v1922_v6 }
  0x50   :  { %832 = vmatpush.bf16.msra.mxu0 %v1805_v59  ;;  %v2512_v12 = vld [vmem:[%s3950_s1 + $0x124] sm:$0xf]  ;;  %v1994_v14 = vld [vmem:[%s3950_s1 + $0x248] sm:$0xf0]  ;;  %v1789_v19 = vor.u32 %v2496_v8, %v1786_v9  ;;  %v2494_v20 = vld [vmem:[%s3950_s1 + $0x94] sm:$0xf] }
  0x51   :  { %845 = vmatpush.bf16.msra.mxu1 %v1869_v1  ;;  %v2548_v54 = vld [vmem:[%s3950_s1 + $0x244] sm:$0xf]  ;;  %v1850_v16 = vld [vmem:[%s3950_s1 + $0x128] sm:$0xf0]  ;;  %v1778_v21 = vld [vmem:[%s3950_s1 + $0x98] sm:$0xf0] }
  0x52   :  { %858 = vmatpush.bf16.msra.mxu2 %v1933_v4  ;;  %v2528_v17 = vld [vmem:[%s3950_s1 + $0x1a4] sm:$0xf]  ;;  %v1914_v18 = vld [vmem:[%s3950_s1 + $0x1a8] sm:$0xf0]  ;;  %v1997_v22 = vor.u32 %v2548_v54, %v1994_v14  ;;  %v1853_v24 = vor.u32 %v2512_v12, %v1850_v16  ;;  %v2510_v26 = vld [vmem:[%s3950_s1 + $0x114] sm:$0xf]  ;;  %v1781_v34 = vor.u32 %v2494_v20, %v1778_v21 }
  0x53   :  { %870 = vmatpush.bf16.msra.mxu3 %v2005_v10  ;;  %v2546_v27 = vld [vmem:[%s3950_s1 + $0x234] sm:$0xf]  ;;  %v1986_v29 = vld [vmem:[%s3950_s1 + $0x238] sm:$0xf0]  ;;  %v1917_v30 = vor.u32 %v2528_v17, %v1914_v18  ;;  %v2492_v35 = vld [vmem:[%s3950_s1 + $0x84] sm:$0xf] }
  0x54   :  { %833 = vmatpush.bf16.msra.mxu0 %v1797_v7  ;;  %v1842_v31 = vld [vmem:[%s3950_s1 + $0x118] sm:$0xf0]  ;;  %v2526_v32 = vld [vmem:[%s3950_s1 + $0x194] sm:$0xf]  ;;  %v1770_v36 = vld [vmem:[%s3950_s1 + $0x88] sm:$0xf0]  ;;  %v1989_v38 = vor.u32 %v2546_v27, %v1986_v29 }
  0x55   :  { %846 = vmatpush.bf16.msra.mxu1 %v1861_v11  ;;  %v1906_v33 = vld [vmem:[%s3950_s1 + $0x198] sm:$0xf0]  ;;  %v2508_v37 = vld [vmem:[%s3950_s1 + $0x104] sm:$0xf]  ;;  %v1845_v39 = vor.u32 %v2510_v26, %v1842_v31  ;;  %v1834_v40 = vld [vmem:[%s3950_s1 + $0x108] sm:$0xf0]  ;;  %v1773_v51 = vor.u32 %v2492_v35, %v1770_v36 }
  0x56   :  { %859 = vmatpush.bf16.msra.mxu2 %v1925_v15  ;;  %v2544_v41 = vld [vmem:[%s3950_s1 + $0x224] sm:$0xf]  ;;  %v1978_v42 = vld [vmem:[%s3950_s1 + $0x228] sm:$0xf0]  ;;  %v1909_v43 = vor.u32 %v2526_v32, %v1906_v33  ;;  %v2570_v44 = vld [vmem:[%s3950_s1 + $0x2f4] sm:$0xf]  ;;  %v1837_v53 = vor.u32 %v2508_v37, %v1834_v40 }
  0x57   :  { %871 = vmatpush.bf16.msra.mxu3 %v1997_v22  ;;  %v2082_v46 = vld [vmem:[%s3950_s1 + $0x2f8] sm:$0xf0]  ;;  %v2586_v47 = vld [vmem:[%s3950_s1 + $0x374] sm:$0xf]  ;;  %v2524_v49 = vld [vmem:[%s3950_s1 + $0x184] sm:$0xf]  ;;  %v1981_v52 = vor.u32 %v2544_v41, %v1978_v42 }
  0x58   :  { %834 = vmatpush.bf16.msra.mxu0 %v1789_v19  ;;  %v2146_v48 = vld [vmem:[%s3950_s1 + $0x378] sm:$0xf0]  ;;  %v1898_v50 = vld [vmem:[%s3950_s1 + $0x188] sm:$0xf0]  ;;  %v2085_v55 = vor.u32 %v2570_v44, %v2082_v46  ;;  %v2542_v56 = vld [vmem:[%s3950_s1 + $0x214] sm:$0xf] }
  0x59   :  { %847 = vmatpush.bf16.msra.mxu1 %v1853_v24  ;;  %v1970_v57 = vld [vmem:[%s3950_s1 + $0x218] sm:$0xf0]  ;;  %v2149_v58 = vor.u32 %v2586_v47, %v2146_v48  ;;  %v2568_v59 = vld [vmem:[%s3950_s1 + $0x2e4] sm:$0xf]  ;;  %v2074_v61 = vld [vmem:[%s3950_s1 + $0x2e8] sm:$0xf0]  ;;  %v1901_v62 = vor.u32 %v2524_v49, %v1898_v50 }
  0x5a   :  { %860 = vmatpush.bf16.msra.mxu2 %v1917_v30  ;;  %v2584_v63 = vld [vmem:[%s3950_s1 + $0x364] sm:$0xf]  ;;  %v2138_v0 = vld [vmem:[%s3950_s1 + $0x368] sm:$0xf0]  ;;  %v1973_v1 = vor.u32 %v2542_v56, %v1970_v57  ;;  %v2077_v2 = vor.u32 %v2568_v59, %v2074_v61  ;;  %v2566_v6 = vld [vmem:[%s3950_s1 + $0x2d4] sm:$0xf] }
  0x5b   :  { %872 = vmatpush.bf16.msra.mxu3 %v1989_v38  ;;  %v2540_v3 = vld [vmem:[%s3950_s1 + $0x204] sm:$0xf]  ;;  %v1962_v4 = vld [vmem:[%s3950_s1 + $0x208] sm:$0xf0]  ;;  %v2141_v5 = vor.u32 %v2584_v63, %v2138_v0  ;;  %v2066_v7 = vld [vmem:[%s3950_s1 + $0x2d8] sm:$0xf0] }
  0x5c   :  { %835 = vmatpush.bf16.msra.mxu0 %v1781_v34  ;;  %v2582_v8 = vld [vmem:[%s3950_s1 + $0x354] sm:$0xf]  ;;  %v2130_v9 = vld [vmem:[%s3950_s1 + $0x358] sm:$0xf0]  ;;  %v1965_v10 = vor.u32 %v2540_v3, %v1962_v4  ;;  %v2069_v11 = vor.u32 %v2566_v6, %v2066_v7  ;;  %v2058_v54 = vld [vmem:[%s3950_s1 + $0x2c8] sm:$0xf0] }
  0x5d   :  { %848 = vmatpush.bf16.msra.mxu1 %v1845_v39  ;;  %v2133_v12 = vor.u32 %v2582_v8, %v2130_v9  ;;  %v2580_v14 = vld [vmem:[%s3950_s1 + $0x344] sm:$0xf]  ;;  %v2562_v16 = vld [vmem:[%s3950_s1 + $0x2b4] sm:$0xf]  ;;  %v2050_v17 = vld [vmem:[%s3950_s1 + $0x2b8] sm:$0xf0] }
  0x5e   :  { %861 = vmatpush.bf16.msra.mxu2 %v1909_v43  ;;  %v2578_v18 = vld [vmem:[%s3950_s1 + $0x334] sm:$0xf]  ;;  %v2114_v19 = vld [vmem:[%s3950_s1 + $0x338] sm:$0xf0]  ;;  %v2053_v20 = vor.u32 %v2562_v16, %v2050_v17  ;;  %v2560_v22 = vld [vmem:[%s3950_s1 + $0x2a4] sm:$0xf] }
  0x5f   :  { %873 = vmatpush.bf16.msra.mxu3 %v1981_v52  ;;  %v2117_v21 = vor.u32 %v2578_v18, %v2114_v19  ;;  %v2576_v24 = vld [vmem:[%s3950_s1 + $0x324] sm:$0xf]  ;;  %v2106_v26 = vld [vmem:[%s3950_s1 + $0x328] sm:$0xf0]  ;;  %v2558_v30 = vld [vmem:[%s3950_s1 + $0x294] sm:$0xf] }
  0x60   :  { %836 = vmatpush.bf16.msra.mxu0 %v1773_v51  ;;  %v2109_v29 = vor.u32 %v2576_v24, %v2106_v26  ;;  %v2034_v31 = vld [vmem:[%s3950_s1 + $0x298] sm:$0xf0]  ;;  %v2574_v32 = vld [vmem:[%s3950_s1 + $0x314] sm:$0xf]  ;;  %v2556_v36 = vld [vmem:[%s3950_s1 + $0x284] sm:$0xf] }
  0x61   :  { %849 = vmatpush.bf16.msra.mxu1 %v1837_v53  ;;  %v2098_v33 = vld [vmem:[%s3950_s1 + $0x318] sm:$0xf0]  ;;  %v2037_v34 = vor.u32 %v2558_v30, %v2034_v31  ;;  %v2026_v37 = vld [vmem:[%s3950_s1 + $0x288] sm:$0xf0]  ;;  %v2572_v38 = vld [vmem:[%s3950_s1 + $0x304] sm:$0xf] }
  0x62   :  { %862 = vmatpush.bf16.msra.mxu2 %v1901_v62  ;;  %v2101_v35 = vor.u32 %v2574_v32, %v2098_v33  ;;  %v2090_v39 = vld [vmem:[%s3950_s1 + $0x308] sm:$0xf0]  ;;  %v2029_v40 = vor.u32 %v2556_v36, %v2026_v37  ;;  %v2210_v44 = vld [vmem:[%s3952_s3 + $0x70] sm:$0xf]  ;;  %v2603_v46 = vld [vmem:[%s3952_s3 + $0x74] sm:$0xf0] }
  0x63   :  { %837 = vmatmul.bf16.vlgmr.msra.gmra.mxu0 %v3030_v60  ;;  %874 = vmatpush.bf16.msra.mxu3 %v1973_v1  ;;  %v2564_v60 = vld [vmem:[%s3950_s1 + $0x2c4] sm:$0xf]  ;;  %v2093_v41 = vor.u32 %v2572_v38, %v2090_v39  ;;  %v2602_v47 = vld [vmem:[%s3952_s3 + $0x74] sm:$0xf]  ;;  %v2211_v48 = vor.u32 %v2603_v46, %v2210_v44  ;;  %v3507_v49 = vld [vmem:[%s3951_s2] sm:$0x3] }
  0x64   :  { %881 = vmatpush.bf16.msrb.mxu0 %v2085_v55  ;;  %850 = vmatmul.bf16.vlgmr.msra.gmra.mxu1 %v2996_v45  ;;  %v2122_v45 = vld [vmem:[%s3950_s1 + $0x348] sm:$0xf0]  ;;  %v2202_v51 = vld [vmem:[%s3952_s3 + $0x60] sm:$0xf]  ;;  %v2601_v52 = vld [vmem:[%s3952_s3 + $0x64] sm:$0xf0] }
  0x65   :  { %894 = vmatpush.bf16.msrb.mxu1 %v2149_v58  ;;  %863 = vmatmul.bf16.vlgmr.msra.gmra.mxu2 %v3068_v13  ;;  %v2061_v13 = vor.u32 %v2564_v60, %v2058_v54  ;;  %v2125_v15 = vor.u32 %v2580_v14, %v2122_v45  ;;  %v2600_v53 = vld [vmem:[%s3952_s3 + $0x64] sm:$0xf]  ;;  %v2203_v55 = vor.u32 %v2601_v52, %v2202_v51  ;;  %v2204_v56 = vld [vmem:[%s3952_s3 + $0x68] sm:$0xf0]  ;;  %v161_v61 = vperm.slane %v3507_v49, 0  ;;  %s2720_s2 = smov [#allocation2]  }
  0x66   :  { %1145 = vmatpush.bf16.msrb.mxu2 %v2211_v48  ;;  %v2207_v59 = vor.u32 %v2600_v53, %v2204_v56  ;;  %v2194_v62 = vld [vmem:[%s3952_s3 + $0x50] sm:$0xf]  ;;  %v2599_v63 = vld [vmem:[%s3952_s3 + $0x54] sm:$0xf0]  ;;  %v2598_v0 = vld [vmem:[%s3952_s3 + $0x54] sm:$0xf] }
  0x67   :  { %875 = vmatpush.bf16.msra.mxu3 %v1965_v10  ;;  %v2195_v1 = vor.u32 %v2599_v63, %v2194_v62  ;;  %v2186_v7 = vld [vmem:[%s3952_s3 + $0x40] sm:$0xf]  ;;  %v2597_v8 = vld [vmem:[%s3952_s3 + $0x44] sm:$0xf0]  ;;  %v2596_v9 = vld [vmem:[%s3952_s3 + $0x44] sm:$0xf] }
  0x68   :  { %882 = vmatpush.bf16.msrb.mxu0 %v2077_v2  ;;  %v2196_v2 = vld [vmem:[%s3952_s3 + $0x58] sm:$0xf0]  ;;  %v2187_v10 = vor.u32 %v2597_v8, %v2186_v7  ;;  %v2178_v54 = vld [vmem:[%s3952_s3 + $0x30] sm:$0xf]  ;;  %v2595_v14 = vld [vmem:[%s3952_s3 + $0x34] sm:$0xf0] }
  0x69   :  { %895 = vmatpush.bf16.msrb.mxu1 %v2141_v5  ;;  %v2199_v4 = vor.u32 %v2598_v0, %v2196_v2  ;;  %v2594_v45 = vld [vmem:[%s3952_s3 + $0x34] sm:$0xf]  ;;  %v2170_v19 = vld [vmem:[%s3952_s3 + $0x20] sm:$0xf]  ;;  %v2164_v32 = vld [vmem:[%s3952_s3 + $0x18] sm:$0xf0] }
  0x6a   :  { %876 = vmatmul.bf16.vlgmr.msra.gmra.mxu3 %v3209_v23  ;;  %v2042_v23 = vld [vmem:[%s3950_s1 + $0x2a8] sm:$0xf0]  ;;  %1146 = vmatpush.bf16.msrb.mxu2 %v2203_v55  ;;  %v2590_v31 = vld [vmem:[%s3952_s3 + $0x14] sm:$0xf]  ;;  %v2154_v36 = vld [vmem:[%s3952_s3] sm:$0xf] }
  0x6b   :  { %v2045_v27 = vor.u32 %v2560_v22, %v2042_v23  ;;  %v2172_v23 = vld [vmem:[%s3952_s3 + $0x28] sm:$0xf0]  ;;  %v2589_v37 = vld [vmem:[%s3952_s3 + $0x4] sm:$0xf0]  ;;  %v2588_v38 = vld [vmem:[%s3952_s3 + $0x4] sm:$0xf] }
  0x6c   :  { %883 = vmatpush.bf16.msrb.mxu0 %v2069_v11  ;;  %v2188_v11 = vld [vmem:[%s3952_s3 + $0x48] sm:$0xf0]  ;;  %v2276_v63 = vld [vmem:[%s3952_s3 + $0xf8] sm:$0xf0]  ;;  %v2617_v7 = vld [vmem:[%s3952_s3 + $0xe4] sm:$0xf0] }
  0x6d   :  { %896 = vmatpush.bf16.msrb.mxu1 %v2133_v12  ;;  %v2191_v12 = vor.u32 %v2596_v9, %v2188_v11  ;;  %v2616_v8 = vld [vmem:[%s3952_s3 + $0xe4] sm:$0xf]  ;;  %s1691_s17 = sshll.u32 %s2720_s2, 4  ;;  %s1693_s0 = sshll.u32 %s3958_s9, 4  ;;  %s1692_s17 = int_to_ptr.vmem [resolvable:$true] %s1691_s17  ;;  %s1694_s0 = int_to_ptr.hbm [resolvable:$true] %s1693_s0 }
  0x6e   :  { %1147 = vmatpush.bf16.msrb.mxu2 %v2195_v1 }
  0x70   :  { %884 = vmatpush.bf16.msrb.mxu0 %v2061_v13  ;;  %v2179_v13 = vor.u32 %v2595_v14, %v2178_v54  ;;  %v2258_v14 = vld [vmem:[%s3952_s3 + $0xd0] sm:$0xf] }
  0x71   :  { %897 = vmatpush.bf16.msrb.mxu1 %v2125_v15  ;;  %v2180_v15 = vld [vmem:[%s3952_s3 + $0x38] sm:$0xf0] }
  0x72   :  { %1148 = vmatpush.bf16.msrb.mxu2 %v2187_v10  ;;  %v2183_v17 = vor.u32 %v2594_v45, %v2180_v15  ;;  %v2268_v10 = vld [vmem:[%s3952_s3 + $0xe8] sm:$0xf0]  ;;  %v2615_v45 = vld [vmem:[%s3952_s3 + $0xd4] sm:$0xf0]  ;;  %v162_v15 = vperm.slane %v3507_v49, 1 }
  0x73   :  { %v2613_v49 = vld [vmem:[%s3952_s3 + $0xc4] sm:$0xf0] }
  0x74   :  { %885 = vmatpush.bf16.msrb.mxu0 %v2053_v20  ;;  %v2593_v20 = vld [vmem:[%s3952_s3 + $0x24] sm:$0xf0] }
  0x75   :  { %898 = vmatpush.bf16.msrb.mxu1 %v2117_v21  ;;  %v2592_v21 = vld [vmem:[%s3952_s3 + $0x24] sm:$0xf]  ;;  %v2171_v22 = vor.u32 %v2593_v20, %v2170_v19  ;;  %v2259_v19 = vor.u32 %v2615_v45, %v2258_v14  ;;  %v2260_v20 = vld [vmem:[%s3952_s3 + $0xd8] sm:$0xf0] }
  0x76   :  { %1149 = vmatpush.bf16.msrb.mxu2 %v2179_v13  ;;  %v2175_v24 = vor.u32 %v2592_v21, %v2172_v23  ;;  %v2614_v13 = vld [vmem:[%s3952_s3 + $0xd4] sm:$0xf] }
  0x77   :  { %v2263_v23 = vor.u32 %v2614_v13, %v2260_v20 }
  0x78   :  { %886 = vmatpush.bf16.msrb.mxu0 %v2045_v27  ;;  %v2162_v27 = vld [vmem:[%s3952_s3 + $0x10] sm:$0xf] }
  0x79   :  { %899 = vmatpush.bf16.msrb.mxu1 %v2109_v29  ;;  %v2591_v29 = vld [vmem:[%s3952_s3 + $0x14] sm:$0xf0] }
  0x7a   :  { %1150 = vmatpush.bf16.msrb.mxu2 %v2171_v22  ;;  %v2163_v30 = vor.u32 %v2591_v29, %v2162_v27 }
  0x7c   :  { %887 = vmatpush.bf16.msrb.mxu0 %v2037_v34 }
  0x7d   :  { %900 = vmatpush.bf16.msrb.mxu1 %v2101_v35  ;;  %v2167_v35 = vor.u32 %v2590_v31, %v2164_v32 }
  0x7e   :  { %1151 = vmatpush.bf16.msrb.mxu2 %v2163_v30  ;;  %v2252_v30 = vld [vmem:[%s3952_s3 + $0xc8] sm:$0xf0] }
  0x80   :  { %888 = vmatpush.bf16.msrb.mxu0 %v2029_v40  ;;  %v2155_v40 = vor.u32 %v2589_v37, %v2154_v36 }
  0x81   :  { %901 = vmatpush.bf16.msrb.mxu1 %v2093_v41  ;;  %v2156_v41 = vld [vmem:[%s3952_s3 + $0x8] sm:$0xf0] }
  0x82   :  { %1152 = vmatpush.bf16.msrb.mxu2 %v2155_v40 }
  0x83   :  { %889 = vmatmul.bf16.vlgmr.msrb.gmra.mxu0 %v3214_v25  ;;  %v2212_v25 = vld [vmem:[%s3952_s3 + $0x78] sm:$0xf0] }
  0x84   :  { %902 = vmatmul.bf16.vlgmr.msrb.gmra.mxu1 %v3222_v28  ;;  %v2215_v28 = vor.u32 %v2602_v47, %v2212_v25 }
  0x86   :  { %1171 = vmatpush.bf16.msra.mxu0 %v2215_v28 }
  0x8a   :  { %1172 = vmatpush.bf16.msra.mxu0 %v2207_v59  ;;  %v2618_v59 = vld [vmem:[%s3952_s3 + $0xf4] sm:$0xf] }
  0x8b   :  { %v2279_v2 = vor.u32 %v2618_v59, %v2276_v63  ;;  %v2604_v59 = vld [vmem:[%s3952_s3 + $0x84] sm:$0xf] }
  0x8d   :  { %1184 = vmatpush.bf16.msra.mxu1 %v2279_v2 }
  0x8e   :  { %1173 = vmatpush.bf16.msra.mxu0 %v2199_v4 }
  0x92   :  { %1174 = vmatpush.bf16.msra.mxu0 %v2191_v12  ;;  %v2271_v12 = vor.u32 %v2616_v8, %v2268_v10 }
  0x94   :  { %1185 = vmatpush.bf16.msra.mxu1 %v2271_v12 }
  0x96   :  { %1175 = vmatpush.bf16.msra.mxu0 %v2183_v17 }
  0x98   :  { %1186 = vmatpush.bf16.msra.mxu1 %v2263_v23  ;;  %v2651_v23 = vld [vmem:[%s3954_s5 + $0xf4] sm:$0xf0] }
  0x9a   :  { %1176 = vmatpush.bf16.msra.mxu0 %v2175_v24  ;;  %v2250_v24 = vld [vmem:[%s3952_s3 + $0xc0] sm:$0xf] }
  0x9b   :  { %v2251_v29 = vor.u32 %v2613_v49, %v2250_v24  ;;  %v2650_v24 = vld [vmem:[%s3954_s5 + $0xf4] sm:$0xf] }
  0x9e   :  { %1177 = vmatpush.bf16.msra.mxu0 %v2167_v35  ;;  %v2610_v35 = vld [vmem:[%s3952_s3 + $0xb4] sm:$0xf] }
  0xa0   :  { %v734_v42 = vpop.f32.mrf.mxu0 }
  0xa1   :  { %v747_v43 = vpop.f32.mrf.mxu1  ;;  %v735_v5 = vadd.f32 %v734_v42, %v161_v61  ;;  %v2159_v42 = vor.u32 %v2588_v38, %v2156_v41  ;;  %v2234_v41 = vld [vmem:[%s3952_s3 + $0xa0] sm:$0xf] }
  0xa3   :  { %v748_v60 = vadd.f32 %v747_v43, %v735_v5  ;;  %1178 = vmatpush.bf16.msra.mxu0 %v2159_v42  ;;  %v2609_v42 = vld [vmem:[%s3952_s3 + $0xa4] sm:$0xf0] }
  0xa8   :  { %v760_v50 = vpop.f32.mrf.mxu2  ;;  %v736_v57 = vpop.f32.mrf.mxu0 }
  0xa9   :  { %v749_v58 = vpop.f32.mrf.mxu1  ;;  %v761_v18 = vadd.f32 %v760_v50, %v748_v60  ;;  %v2274_v57 = vld [vmem:[%s3952_s3 + $0xf0] sm:$0xf] }
  0xaa   :  { %v2619_v58 = vld [vmem:[%s3952_s3 + $0xf4] sm:$0xf0] }
  0xab   :  { %v2275_v62 = vor.u32 %v2619_v58, %v2274_v57 }
  0xad   :  { %v773_v3 = vpop.f32.mrf.mxu3  ;;  %1158 = vmatpush.bf16.msrb.mxu3 %v2275_v62 }
  0xae   :  { %v774_v26 = vadd.f32 %v773_v3, %v761_v18 }
  0xb0   :  { %v762_v6 = vpop.f32.mrf.mxu2 }
  0xb1   :  { %v2266_v6 = vld [vmem:[%s3952_s3 + $0xe0] sm:$0xf] }
  0xb2   :  { %v2267_v9 = vor.u32 %v2617_v7, %v2266_v6 }
  0xb4   :  { %1159 = vmatpush.bf16.msrb.mxu3 %v2267_v9 }
  0xb5   :  { %v775_v16 = vpop.f32.mrf.mxu3 }
  0xb8   :  { %1160 = vmatpush.bf16.msrb.mxu3 %v2259_v19 }
  0xbc   :  { %1161 = vmatpush.bf16.msrb.mxu3 %v2251_v29  ;;  %v2396_v29 = vld [vmem:[%s3954_s5 + $0xe0] sm:$0xf] }
  0xc0   :  { %v786_v33 = vpop.f32.mrf.mxu0 }
  0xc1   :  { %v799_v34 = vpop.f32.mrf.mxu1  ;;  %v787_v39 = vadd.f32 %v786_v33, %v774_v26  ;;  %v2612_v26 = vld [vmem:[%s3952_s3 + $0xc4] sm:$0xf]  ;;  %v2242_v33 = vld [vmem:[%s3952_s3 + $0xb0] sm:$0xf] }
  0xc2   :  { %v2255_v31 = vor.u32 %v2612_v26, %v2252_v30  ;;  %v2406_v26 = vld [vmem:[%s3954_s5 + $0xf8] sm:$0xf0]  ;;  %v2649_v30 = vld [vmem:[%s3954_s5 + $0xe4] sm:$0xf0] }
  0xc3   :  { %v800_v43 = vadd.f32 %v799_v34, %v787_v39  ;;  %v2611_v34 = vld [vmem:[%s3952_s3 + $0xb4] sm:$0xf0]  ;;  %v2244_v39 = vld [vmem:[%s3952_s3 + $0xb8] sm:$0xf0] }
  0xc4   :  { %1187 = vmatpush.bf16.msra.mxu1 %v2255_v31  ;;  %v2243_v38 = vor.u32 %v2611_v34, %v2242_v33  ;;  %v2247_v40 = vor.u32 %v2610_v35, %v2244_v39  ;;  %v2648_v31 = vld [vmem:[%s3954_s5 + $0xe4] sm:$0xf]  ;;  %v2398_v33 = vld [vmem:[%s3954_s5 + $0xe8] sm:$0xf0]  ;;  %v2340_v35 = vld [vmem:[%s3954_s5 + $0x70] sm:$0xf] }
  0xc5   :  { %v2401_v34 = vor.u32 %v2648_v31, %v2398_v33  ;;  %v2342_v39 = vld [vmem:[%s3954_s5 + $0x78] sm:$0xf0] }
  0xc6   :  { %1162 = vmatpush.bf16.msrb.mxu3 %v2243_v38 }
  0xc8   :  { %v812_v44 = vpop.f32.mrf.mxu2  ;;  %v788_v47 = vpop.f32.mrf.mxu0  ;;  %1188 = vmatpush.bf16.msra.mxu1 %v2247_v40 }
  0xc9   :  { %v813_v46 = vadd.f32 %v812_v44, %v800_v43  ;;  %v801_v48 = vpop.f32.mrf.mxu1  ;;  %v2608_v43 = vld [vmem:[%s3952_s3 + $0xa4] sm:$0xf]  ;;  %v2236_v47 = vld [vmem:[%s3952_s3 + $0xa8] sm:$0xf0] }
  0xca   :  { %v2239_v48 = vor.u32 %v2608_v43, %v2236_v47  ;;  %v2646_v43 = vld [vmem:[%s3954_s5 + $0xd4] sm:$0xf] }
  0xcb   :  { %v2150_v25 = vmul.f32 -1.442695, %v813_v46  ;;  %v2235_v46 = vor.u32 %v2609_v42, %v2234_v41  ;;  %v2388_v41 = vld [vmem:[%s3954_s5 + $0xd0] sm:$0xf]  ;;  %v2647_v42 = vld [vmem:[%s3954_s5 + $0xd4] sm:$0xf0] }
  0xcc   :  { %1189 = vmatpush.bf16.msra.mxu1 %v2239_v48  ;;  %v2332_v48 = vld [vmem:[%s3954_s5 + $0x60] sm:$0xf] }
  0xcd   :  { %2670 = vpow2.f32 %v2150_v25  ;;  %v825_v28 = vpop.f32.mrf.mxu3  ;;  %1163 = vmatpush.bf16.msrb.mxu3 %v2235_v46  ;;  %v2390_v46 = vld [vmem:[%s3954_s5 + $0xd8] sm:$0xf0] }
  0xce   :  { %v826_v27 = vadd.f32 %v825_v28, %v162_v15  ;;  %v2226_v28 = vld [vmem:[%s3952_s3 + $0x90] sm:$0xf]  ;;  %v2393_v47 = vor.u32 %v2646_v43, %v2390_v46  ;;  %v2636_v43 = vld [vmem:[%s3954_s5 + $0x84] sm:$0xf]  ;;  %v2350_v46 = vld [vmem:[%s3954_s5 + $0x88] sm:$0xf0] }
  0xd0   :  { %v814_v50 = vpop.f32.mrf.mxu2 }
  0xd1   :  { %v2607_v50 = vld [vmem:[%s3952_s3 + $0x94] sm:$0xf0] }
  0xd3   :  { %v2671_v51 = vpop.eup %2670 }
  0xd4   :  { %v913_v52 = vadd.f32 1.0, %v2671_v51  ;;  %v2606_v51 = vld [vmem:[%s3952_s3 + $0x94] sm:$0xf] }
  0xd5   :  { %v827_v53 = vpop.f32.mrf.mxu3 }
  0xd6   :  { %2672 = vrcp.f32 %v913_v52  ;;  %v924_v3 = vand.u32 2147483647, %v913_v52  ;;  %v926_v4 = vand.u32 2147483648, %v913_v52  ;;  %vm920_vm1 = vweird.f32 %v913_v52  ;;  %v2228_v53 = vld [vmem:[%s3952_s3 + $0x98] sm:$0xf0] }
  0xd7   :  { %v2231_v58 = vor.u32 %v2606_v51, %v2228_v53  ;;  %v2334_v51 = vld [vmem:[%s3954_s5 + $0x68] sm:$0xf0]  ;;  %v2380_v53 = vld [vmem:[%s3954_s5 + $0xc0] sm:$0xf] }
  0xd8   :  { %vm925_vm3 = vcmp.eq.f32.partialorder %v924_v3, 8.507059e+37  ;;  %v927_v60 = vor.u32 1.1754944e-38, %v926_v4 }
  0xd9   :  { %1190 = vmatpush.bf16.msra.mxu1 %v2231_v58  ;;  %v2382_v58 = vld [vmem:[%s3954_s5 + $0xc8] sm:$0xf0] }
  0xdc   :  { %v2673_v55 = vpop.eup %2672 }
  0xdd   :  { %v916_v56 = vmul.f32 %v2673_v55, %v913_v52  ;;  %vm921_vm0 = vweird.f32 %v2673_v55  ;;  %v2227_v52 = vor.u32 %v2607_v50, %v2226_v28  ;;  %v2632_v28 = vld [vmem:[%s3954_s5 + $0x64] sm:$0xf] }
  0xde   :  { %vm922_vm2 = vmor %vm920_vm1, %vm921_vm0 }
  0xdf   :  { %v917_v0 = vsub.f32 1.0, %v916_v56  ;;  %v2605_v56 = vld [vmem:[%s3952_s3 + $0x84] sm:$0xf0]  ;;  %1164 = vmatpush.bf16.msrb.mxu3 %v2227_v52  ;;  %v2337_v52 = vor.u32 %v2632_v28, %v2334_v51  ;;  %v2294_v51 = vld [vmem:[%s3954_s5 + $0x18] sm:$0xf0] }
  0xe0   :  { %v838_v61 = vpop.f32.mrf.mxu0 }
  0xe1   :  { %v851_v1 = vpop.f32.mrf.mxu1  ;;  %v918_v5 = vmul.f32 %v2673_v55, %v917_v0  ;;  %v839_v36 = vadd.f32 %v838_v61, %v826_v27  ;;  %v2220_v61 = vld [vmem:[%s3952_s3 + $0x88] sm:$0xf0]  ;;  %v2409_v27 = vor.u32 %v2650_v24, %v2406_v26 }
  0xe2   :  { %v2223_v0 = vor.u32 %v2604_v59, %v2220_v61  ;;  %v2324_v61 = vld [vmem:[%s3954_s5 + $0x50] sm:$0xf] }
  0xe3   :  { %v919_v11 = vadd.f32 %v2673_v55, %v918_v5  ;;  %v852_v44 = vadd.f32 %v851_v1, %v839_v36  ;;  %v2635_v36 = vld [vmem:[%s3954_s5 + $0x74] sm:$0xf0] }
  0xe4   :  { %1191 = vmatpush.bf16.msra.mxu1 %v2223_v0  ;;  %v2341_v38 = vor.u32 %v2635_v36, %v2340_v35  ;;  %v2625_v35 = vld [vmem:[%s3954_s5 + $0x24] sm:$0xf0]  ;;  %v2624_v36 = vld [vmem:[%s3954_s5 + $0x24] sm:$0xf] }
  0xe5   :  { %v923_v54 = vsel %vm922_vm2, %v2673_v55, %v919_v11  ;;  %v2218_v55 = vld [vmem:[%s3952_s3 + $0x80] sm:$0xf] }
  0xe6   :  { %v928_v16 = vsel %vm925_vm3, %v927_v60, %v923_v54  ;;  %v2219_v62 = vor.u32 %v2605_v56, %v2218_v55  ;;  %1435 = vmatpush.bf16.msra.mxu2 %v2341_v38  ;;  %v2645_v55 = vld [vmem:[%s3954_s5 + $0xc4] sm:$0xf0]  ;;  %v2644_v56 = vld [vmem:[%s3954_s5 + $0xc4] sm:$0xf] }
  0xe7   :  { %v945_v21 = vpack.c.bf16 %v928_v16, %v928_v16  ;;  %v2385_v59 = vor.u32 %v2644_v56, %v2382_v58  ;;  %v2284_v58 = vld [vmem:[%s3954_s5] sm:$0xf] }
  0xe8   :  { %v840_v17 = vpop.f32.mrf.mxu0  ;;  %v864_v18 = vpop.f32.mrf.mxu2  ;;  %1165 = vmatpush.bf16.msrb.mxu3 %v2219_v62  ;;  %1474 = vmatpush.bf16.msrb.mxu1 %v2409_v27  ;;  %v2631_v62 = vld [vmem:[%s3954_s5 + $0x54] sm:$0xf0]  ;;  %v2356_v27 = vld [vmem:[%s3954_s5 + $0x90] sm:$0xf] }
  0xe9   :  { %v853_v22 = vpop.f32.mrf.mxu1  ;;  %1153 = vmatmul.bf16.vlgmr.msrb.gmra.mxu2 %v945_v21  ;;  %1179 = vmatmul.bf16.vlgmr.msra.gmra.mxu0 %v945_v21  ;;  %v865_v57 = vadd.f32 %v864_v18, %v852_v44  ;;  %v2389_v44 = vor.u32 %v2647_v42, %v2388_v41  ;;  %v2325_v0 = vor.u32 %v2631_v62, %v2324_v61  ;;  %v2348_v41 = vld [vmem:[%s3954_s5 + $0x80] sm:$0xf]  ;;  %v2637_v42 = vld [vmem:[%s3954_s5 + $0x84] sm:$0xf0]  ;;  %v2620_v61 = vld [vmem:[%s3954_s5 + $0x4] sm:$0xf] }
  0xea   :  { %v2404_v22 = vld [vmem:[%s3954_s5 + $0xf0] sm:$0xf]  ;;  %v2286_v62 = vld [vmem:[%s3954_s5 + $0x8] sm:$0xf0] }
  0xeb   :  { %v2405_v49 = vor.u32 %v2651_v23, %v2404_v22  ;;  %v2626_v22 = vld [vmem:[%s3954_s5 + $0x34] sm:$0xf]  ;;  %v979_v23 = vld [vmem:[%s3953_s4] sm:$0x3] }
  0xec   :  { %1475 = vmatpush.bf16.msrb.mxu1 %v2401_v34  ;;  %v2300_v34 = vld [vmem:[%s3954_s5 + $0x20] sm:$0xf] }
  0xed   :  { %v877_v32 = vpop.f32.mrf.mxu3  ;;  %1448 = vmatpush.bf16.msra.mxu3 %v2405_v49  ;;  %v2310_v49 = vld [vmem:[%s3954_s5 + $0x38] sm:$0xf0]  ;;  %v2301_v38 = vor.u32 %v2625_v35, %v2300_v34  ;;  %v2665_v35 = vld [vmem:[%s3956_s7 + $0x68] sm:$0xff] }
  0xee   :  { %v878_v63 = vadd.f32 %v877_v32, %v865_v57  ;;  %v2397_v32 = vor.u32 %v2649_v30, %v2396_v29  ;;  %v2381_v57 = vor.u32 %v2645_v55, %v2380_v53  ;;  %v2313_v26 = vor.u32 %v2626_v22, %v2310_v49  ;;  %v2639_v29 = vld [vmem:[%s3954_s5 + $0x94] sm:$0xf0]  ;;  %v2638_v30 = vld [vmem:[%s3954_s5 + $0x94] sm:$0xf] }
  0xef   :  { %v2357_v31 = vor.u32 %v2639_v29, %v2356_v27  ;;  %v981_v55 = vperm.slane %v979_v23, 0  ;;  %v2659_v34 = vld [vmem:[%s3956_s7 + $0x38] sm:$0xff] }
  0xf0   :  { %v866_v37 = vpop.f32.mrf.mxu2  ;;  %1476 = vmatpush.bf16.msrb.mxu1 %v2393_v47  ;;  %v2292_v47 = vld [vmem:[%s3954_s5 + $0x10] sm:$0xf] }
  0xf1   :  { %v2634_v37 = vld [vmem:[%s3954_s5 + $0x74] sm:$0xf]  ;;  %1449 = vmatpush.bf16.msra.mxu3 %v2397_v32  ;;  %v2358_v32 = vld [vmem:[%s3954_s5 + $0x98] sm:$0xf0] }
  0xf2   :  { %v2345_v40 = vor.u32 %v2634_v37, %v2342_v39  ;;  %v2361_v33 = vor.u32 %v2638_v30, %v2358_v32  ;;  %v982_v37 = vperm.slane %v979_v23, 1  ;;  %v2302_v39 = vld [vmem:[%s3954_s5 + $0x28] sm:$0xf0]  ;;  %v2667_v32 = vld [vmem:[%s3956_s7 + $0x78] sm:$0xff] }
  0xf4   :  { %1461 = vmatpush.bf16.msrb.mxu0 %v2345_v40  ;;  %1477 = vmatpush.bf16.msrb.mxu1 %v2385_v59  ;;  %v2305_v40 = vor.u32 %v2624_v36, %v2302_v39  ;;  %v2621_v59 = vld [vmem:[%s3954_s5 + $0x4] sm:$0xf0]  ;;  %v2658_v36 = vld [vmem:[%s3956_s7 + $0x30] sm:$0xff]  ;;  %v2663_v39 = vld [vmem:[%s3956_s7 + $0x58] sm:$0xff] }
  0xf5   :  { %v879_v25 = vpop.f32.mrf.mxu3  ;;  %1450 = vmatpush.bf16.msra.mxu3 %v2389_v44  ;;  %v2349_v44 = vor.u32 %v2637_v42, %v2348_v41  ;;  %v2662_v41 = vld [vmem:[%s3956_s7 + $0x50] sm:$0xff]  ;;  %v2655_v42 = vld [vmem:[%s3956_s7 + $0x18] sm:$0xff] }
  0xf6   :  { %v2633_v25 = vld [vmem:[%s3954_s5 + $0x64] sm:$0xf0] }
  0xf7   :  { %v2333_v50 = vor.u32 %v2633_v25, %v2332_v48  ;;  %v2623_v48 = vld [vmem:[%s3954_s5 + $0x14] sm:$0xf0]  ;;  %v2353_v25 = vor.u32 %v2636_v43, %v2350_v46  ;;  %v2661_v46 = vld [vmem:[%s3956_s7 + $0x48] sm:$0xff] }
  0xf8   :  { %1462 = vmatpush.bf16.msrb.mxu0 %v2337_v52  ;;  %v2293_v28 = vor.u32 %v2623_v48, %v2292_v47  ;;  %v2654_v48 = vld [vmem:[%s3956_s7 + $0x10] sm:$0xff] }
  0xf9   :  { %1436 = vmatpush.bf16.msra.mxu2 %v2333_v50  ;;  %1451 = vmatpush.bf16.msra.mxu3 %v2381_v57  ;;  %v2622_v50 = vld [vmem:[%s3954_s5 + $0x14] sm:$0xf] }
  0xfa   :  { %v2297_v53 = vor.u32 %v2622_v50, %v2294_v51 }
  0xfd   :  { %1437 = vmatpush.bf16.msra.mxu2 %v2325_v0  ;;  %v2289_v0 = vor.u32 %v2620_v61, %v2286_v62 }
 0x100   :  { %v890_v1 = vpop.f32.mrf.mxu0 }
 0x101   :  { %v891_v2 = vadd.f32 %v890_v1, %v878_v63  ;;  %v903_v3 = vpop.f32.mrf.mxu1  ;;  %v2630_v63 = vld [vmem:[%s3954_s5 + $0x54] sm:$0xf]  ;;  %v2326_v1 = vld [vmem:[%s3954_s5 + $0x58] sm:$0xf0] }
 0x103   :  { %v904_v4 = vadd.f32 %v903_v3, %v891_v2  ;;  %v2329_v2 = vor.u32 %v2630_v63, %v2326_v1  ;;  %v2372_v3 = vld [vmem:[%s3954_s5 + $0xb0] sm:$0xf] }
 0x105   :  { %v2151_v5 = vmul.f32 -1.442695, %v904_v4  ;;  %v2643_v4 = vld [vmem:[%s3954_s5 + $0xb4] sm:$0xf0]  ;;  %1463 = vmatpush.bf16.msrb.mxu0 %v2329_v2 }
 0x107   :  { %2674 = vpow2.f32 %v2151_v5  ;;  %v2642_v5 = vld [vmem:[%s3954_s5 + $0xb4] sm:$0xf] }
 0x108   :  { %v892_v6 = vpop.f32.mrf.mxu0 }
 0x109   :  { %v905_v7 = vpop.f32.mrf.mxu1  ;;  %v2373_v6 = vor.u32 %v2643_v4, %v2372_v3 }
 0x10a   :  { %v2374_v7 = vld [vmem:[%s3954_s5 + $0xb8] sm:$0xf0] }
 0x10b   :  { %1452 = vmatpush.bf16.msra.mxu3 %v2373_v6 }
 0x10d   :  { %v2675_v8 = vpop.eup %2674 }
 0x10e   :  { %v914_v9 = vadd.f32 1.0, %v2675_v8  ;;  %v2377_v8 = vor.u32 %v2642_v5, %v2374_v7 }
 0x110   :  { %2676 = vrcp.f32 %v914_v9  ;;  %v941_v60 = vand.u32 2147483648, %v914_v9  ;;  %v939_v14 = vand.u32 2147483647, %v914_v9  ;;  %vm935_vm5 = vweird.f32 %v914_v9  ;;  %1478 = vmatpush.bf16.msrb.mxu1 %v2377_v8 }
 0x112   :  { %v942_v13 = vor.u32 1.1754944e-38, %v941_v60  ;;  %vm940_vm7 = vcmp.eq.f32.partialorder %v939_v14, 8.507059e+37  ;;  %v2318_v60 = vld [vmem:[%s3954_s5 + $0x48] sm:$0xf0]  ;;  %v2364_v14 = vld [vmem:[%s3954_s5 + $0xa0] sm:$0xf] }
 0x116   :  { %v2677_v10 = vpop.eup %2676 }
 0x117   :  { %v931_v11 = vmul.f32 %v2677_v10, %v914_v9  ;;  %vm936_vm4 = vweird.f32 %v2677_v10  ;;  %v2316_v9 = vld [vmem:[%s3954_s5 + $0x40] sm:$0xf] }
 0x118   :  { %vm937_vm6 = vmor %vm935_vm5, %vm936_vm4 }
 0x119   :  { %v932_v12 = vsub.f32 1.0, %v931_v11  ;;  %v2628_v11 = vld [vmem:[%s3954_s5 + $0x44] sm:$0xf] }
 0x11b   :  { %v933_v54 = vmul.f32 %v2677_v10, %v932_v12 }
 0x11d   :  { %v934_v45 = vadd.f32 %v2677_v10, %v933_v54  ;;  %v2321_v54 = vor.u32 %v2628_v11, %v2318_v60 }
 0x11f   :  { %v938_v15 = vsel %vm937_vm6, %v2677_v10, %v934_v45  ;;  %v2629_v10 = vld [vmem:[%s3954_s5 + $0x44] sm:$0xf0]  ;;  %1464 = vmatpush.bf16.msrb.mxu0 %v2321_v54 }
 0x120   :  { %v943_v16 = vsel %vm940_vm7, %v942_v13, %v938_v15  ;;  %v2317_v12 = vor.u32 %v2629_v10, %v2316_v9  ;;  %v2641_v45 = vld [vmem:[%s3954_s5 + $0xa4] sm:$0xf0]  ;;  %v2640_v13 = vld [vmem:[%s3954_s5 + $0xa4] sm:$0xf] }
 0x121   :  { %v946_v17 = vpack.c.bf16 %v943_v16, %v943_v16  ;;  %v2365_v15 = vor.u32 %v2641_v45, %v2364_v14  ;;  %v2366_v16 = vld [vmem:[%s3954_s5 + $0xa8] sm:$0xf0] }
 0x122   :  { %1438 = vmatpush.bf16.msra.mxu2 %v2317_v12 }
 0x123   :  { %1166 = vmatmul.bf16.vlgmr.msrb.gmra.mxu3 %v946_v17  ;;  %1192 = vmatmul.bf16.vlgmr.msra.gmra.mxu1 %v946_v17  ;;  %v2369_v17 = vor.u32 %v2640_v13, %v2366_v16 }
 0x124   :  { %1453 = vmatpush.bf16.msra.mxu3 %v2365_v15  ;;  %1465 = vmatpush.bf16.msrb.mxu0 %v2313_v26 }
 0x125   :  { %1479 = vmatpush.bf16.msrb.mxu1 %v2369_v17 }
 0x128   :  { %1454 = vmatpush.bf16.msra.mxu3 %v2357_v31  ;;  %1466 = vmatpush.bf16.msrb.mxu0 %v2305_v40  ;;  %v2656_v40 = vld [vmem:[%s3956_s7 + $0x20] sm:$0xff] }
 0x129   :  { %1480 = vmatpush.bf16.msrb.mxu1 %v2361_v33  ;;  %v2666_v33 = vld [vmem:[%s3956_s7 + $0x70] sm:$0xff] }
 0x12c   :  { %1455 = vmatpush.bf16.msra.mxu3 %v2349_v44  ;;  %1467 = vmatpush.bf16.msrb.mxu0 %v2297_v53  ;;  %v1269_v44 = vld [vmem:[%s3955_s6] sm:$0x3] }
 0x12d   :  { %1481 = vmatpush.bf16.msrb.mxu1 %v2353_v25  ;;  %v1272_v47 = vperm.slane %v1269_v44, 1  ;;  %v2660_v25 = vld [vmem:[%s3956_s7 + $0x40] sm:$0xff] }
 0x130   :  { %1468 = vmatpush.bf16.msrb.mxu0 %v2289_v0  ;;  %1672 = vmatpush.bf16.msrb.mxu3 %v2667_v32 }
 0x134   :  { %1673 = vmatpush.bf16.msrb.mxu3 %v2666_v33 }
 0x138   :  { %1674 = vmatpush.bf16.msrb.mxu3 %v2665_v35 }
 0x166   :  { %v3691_v18 = vpop.f32.mrf.mxu0 }
 0x167   :  { %v1181_v52 = vadd.f32 %v3691_v18, %v982_v37  ;;  %v2285_v18 = vor.u32 %v2621_v59, %v2284_v58  ;;  %v2664_v37 = vld [vmem:[%s3956_s7 + $0x60] sm:$0xff] }
 0x168   :  { %1675 = vmatpush.bf16.msrb.mxu3 %v2664_v37 }
 0x16c   :  { %v3693_v19 = vpop.f32.mrf.mxu2  ;;  %1676 = vmatpush.bf16.msrb.mxu3 %v2663_v39 }
 0x16d   :  { %v1155_v1 = vadd.f32 %v3693_v19, %v981_v55 }
 0x16e   :  { %v1182_v20 = vpop.f32.mrf.mxu0 }
 0x16f   :  { %v2308_v20 = vld [vmem:[%s3954_s5 + $0x30] sm:$0xf] }
 0x170   :  { %1677 = vmatpush.bf16.msrb.mxu3 %v2662_v41 }
 0x174   :  { %v1156_v21 = vpop.f32.mrf.mxu2  ;;  %1678 = vmatpush.bf16.msrb.mxu3 %v2661_v46 }
 0x175   :  { %v2627_v21 = vld [vmem:[%s3954_s5 + $0x34] sm:$0xf0] }
 0x176   :  { %v2309_v24 = vor.u32 %v2627_v21, %v2308_v20 }
 0x178   :  { %1439 = vmatpush.bf16.msra.mxu2 %v2309_v24  ;;  %1679 = vmatpush.bf16.msrb.mxu3 %v2660_v25 }
 0x17c   :  { %1440 = vmatpush.bf16.msra.mxu2 %v2301_v38  ;;  %v2657_v38 = vld [vmem:[%s3956_s7 + $0x28] sm:$0xff] }
 0x180   :  { %1441 = vmatpush.bf16.msra.mxu2 %v2293_v28  ;;  %v2653_v28 = vld [vmem:[%s3956_s7 + $0x8] sm:$0xff] }
 0x184   :  { %1442 = vmatpush.bf16.msra.mxu2 %v2285_v18 }
 0x188   :  { %1659 = vmatpush.bf16.msrb.mxu2 %v2659_v34 }
 0x18c   :  { %1660 = vmatpush.bf16.msrb.mxu2 %v2658_v36 }
 0x190   :  { %1661 = vmatpush.bf16.msrb.mxu2 %v2657_v38 }
 0x194   :  { %1662 = vmatpush.bf16.msrb.mxu2 %v2656_v40 }
 0x198   :  { %1663 = vmatpush.bf16.msrb.mxu2 %v2655_v42 }
 0x19c   :  { %1664 = vmatpush.bf16.msrb.mxu2 %v2654_v48 }
 0x1a0   :  { %v1193_v56 = vpop.f32.mrf.mxu1  ;;  %1665 = vmatpush.bf16.msrb.mxu2 %v2653_v28 }
 0x1a1   :  { %v1194_v57 = vadd.f32 %v1193_v56, %v1181_v52  ;;  %v1271_v56 = vperm.slane %v1269_v44, 0 }
 0x1a3   :  { %v2281_v63 = vmul.f32 -1.442695, %v1194_v57  ;;  %v2652_v57 = vld [vmem:[%s3956_s7] sm:$0xff] }
 0x1a4   :  { %1666 = vmatpush.bf16.msrb.mxu2 %v2652_v57 }
 0x1a5   :  { %2678 = vpow2.f32 %v2281_v63 }
 0x1a6   :  { %v1167_v2 = vpop.f32.mrf.mxu3 }
 0x1a7   :  { %v1168_v3 = vadd.f32 %v1167_v2, %v1155_v1 }
 0x1a8   :  { %v1195_v4 = vpop.f32.mrf.mxu1 }
 0x1a9   :  { %v2280_v5 = vmul.f32 -1.442695, %v1168_v3 }
 0x1ab   :  { %v2679_v6 = vpop.eup %2678  ;;  %2680 = vpow2.f32 %v2280_v5 }
 0x1ac   :  { %v1204_v7 = vadd.f32 1.0, %v2679_v6 }
 0x1ae   :  { %2682 = vrcp.f32 %v1204_v7  ;;  %v1169_v8 = vpop.f32.mrf.mxu3  ;;  %v1231_v54 = vand.u32 2147483648, %v1204_v7  ;;  %v1229_v14 = vand.u32 2147483647, %v1204_v7  ;;  %vm1225_vm9 = vweird.f32 %v1204_v7 }
 0x1b0   :  { %v1232_v16 = vor.u32 1.1754944e-38, %v1231_v54  ;;  %vm1230_vm11 = vcmp.eq.f32.partialorder %v1229_v14, 8.507059e+37 }
 0x1b1   :  { %v2681_v9 = vpop.eup %2680 }
 0x1b2   :  { %v1203_v10 = vadd.f32 1.0, %v2681_v9 }
 0x1b4   :  { %v2683_v11 = vpop.eup %2682  ;;  %2684 = vrcp.f32 %v1203_v10  ;;  %v1216_v22 = vand.u32 2147483648, %v1203_v10  ;;  %v1214_v49 = vand.u32 2147483647, %v1203_v10  ;;  %vm1210_vm13 = vweird.f32 %v1203_v10 }
 0x1b5   :  { %v1221_v12 = vmul.f32 %v2683_v11, %v1204_v7  ;;  %vm1226_vm8 = vweird.f32 %v2683_v11 }
 0x1b6   :  { %vm1227_vm10 = vmor %vm1225_vm9, %vm1226_vm8  ;;  %v1217_v27 = vor.u32 1.1754944e-38, %v1216_v22  ;;  %vm1215_vm15 = vcmp.eq.f32.partialorder %v1214_v49, 8.507059e+37 }
 0x1b7   :  { %v1222_v60 = vsub.f32 1.0, %v1221_v12 }
 0x1b9   :  { %v1223_v19 = vmul.f32 %v2683_v11, %v1222_v60 }
 0x1ba   :  { %v2685_v45 = vpop.eup %2684 }
 0x1bb   :  { %v1206_v13 = vmul.f32 %v2685_v45, %v1203_v10  ;;  %v1224_v15 = vadd.f32 %v2683_v11, %v1223_v19  ;;  %vm1211_vm12 = vweird.f32 %v2685_v45 }
 0x1bc   :  { %vm1212_vm14 = vmor %vm1210_vm13, %vm1211_vm12 }
 0x1bd   :  { %v1207_v17 = vsub.f32 1.0, %v1206_v13  ;;  %v1228_v20 = vsel %vm1227_vm10, %v2683_v11, %v1224_v15 }
 0x1be   :  { %v1233_v21 = vsel %vm1230_vm11, %v1232_v16, %v1228_v20 }
 0x1bf   :  { %v1236_v23 = vpack.c.bf16 %v1233_v21, %v1233_v21  ;;  %v1208_v24 = vmul.f32 %v2685_v45, %v1207_v17 }
 0x1c1   :  { %1456 = vmatmul.bf16.vlgmr.msra.gmra.mxu3 %v1236_v23  ;;  %1482 = vmatmul.bf16.vlgmr.msrb.gmra.mxu1 %v1236_v23  ;;  %v1209_v26 = vadd.f32 %v2685_v45, %v1208_v24 }
 0x1c3   :  { %v1213_v29 = vsel %vm1212_vm14, %v2685_v45, %v1209_v26 }
 0x1c4   :  { %v1218_v30 = vsel %vm1215_vm15, %v1217_v27, %v1213_v29  ;;  %v2669_v27 = vld [vmem:[%s3957_s8] ss:$0 sm:$0xff] }
 0x1c5   :  { %v1235_v31 = vpack.c.bf16 %v1218_v30, %v1218_v30 }
 0x1c7   :  { %1443 = vmatmul.bf16.vlgmr.msra.gmra.mxu2 %v1235_v31  ;;  %1469 = vmatmul.bf16.vlgmr.msrb.gmra.mxu0 %v1235_v31 }
 0x23e   :  { %v1483_v43 = vpop.f32.mrf.mxu1 }
 0x244   :  { %v1457_v50 = vpop.f32.mrf.mxu3  ;;  %v1470_v51 = vpop.f32.mrf.mxu0 }
 0x245   :  { %v1471_v52 = vadd.f32 %v1470_v51, %v1272_v47 }
 0x246   :  { %v1485_v53 = vpop.f32.mrf.mxu1 }
 0x247   :  { %v1484_v55 = vadd.f32 %v1483_v43, %v1471_v52 }
 0x249   :  { %v2411_v58 = vmul.f32 -1.442695, %v1484_v55 }
 0x24a   :  { %v1444_v59 = vpop.f32.mrf.mxu2 }
 0x24b   :  { %2686 = vpow2.f32 %v2411_v58  ;;  %v1445_v61 = vadd.f32 %v1444_v59, %v1271_v56 }
 0x24c   :  { %v1459_v18 = vpop.f32.mrf.mxu3  ;;  %v1472_v62 = vpop.f32.mrf.mxu0 }
 0x24d   :  { %v1458_v63 = vadd.f32 %v1457_v50, %v1445_v61 }
 0x24f   :  { %v2410_v0 = vmul.f32 -1.442695, %v1458_v63 }
 0x251   :  { %v2687_v1 = vpop.eup %2686  ;;  %2688 = vpow2.f32 %v2410_v0 }
 0x252   :  { %v1494_v2 = vadd.f32 1.0, %v2687_v1  ;;  %v1446_v3 = vpop.f32.mrf.mxu2 }
 0x254   :  { %2690 = vrcp.f32 %v1494_v2  ;;  %v1521_v9 = vand.u32 2147483648, %v1494_v2  ;;  %v1519_v11 = vand.u32 2147483647, %v1494_v2  ;;  %vm1515_vm1 = vweird.f32 %v1494_v2 }
 0x256   :  { %v1522_v19 = vor.u32 1.1754944e-38, %v1521_v9  ;;  %vm1520_vm3 = vcmp.eq.f32.partialorder %v1519_v11, 8.507059e+37 }
 0x257   :  { %v2689_v4 = vpop.eup %2688 }
 0x258   :  { %v1493_v5 = vadd.f32 1.0, %v2689_v4 }
 0x25a   :  { %v2691_v6 = vpop.eup %2690  ;;  %2692 = vrcp.f32 %v1493_v5  ;;  %v1506_v15 = vand.u32 2147483648, %v1493_v5  ;;  %v1504_v20 = vand.u32 2147483647, %v1493_v5  ;;  %vm1500_vm5 = vweird.f32 %v1493_v5 }
 0x25b   :  { %v1511_v7 = vmul.f32 %v2691_v6, %v1494_v2  ;;  %vm1516_vm0 = vweird.f32 %v2691_v6 }
 0x25c   :  { %vm1517_vm2 = vmor %vm1515_vm1, %vm1516_vm0  ;;  %v1507_v22 = vor.u32 1.1754944e-38, %v1506_v15  ;;  %vm1505_vm7 = vcmp.eq.f32.partialorder %v1504_v20, 8.507059e+37 }
 0x25d   :  { %v1512_v8 = vsub.f32 1.0, %v1511_v7 }
 0x25f   :  { %v1513_v10 = vmul.f32 %v2691_v6, %v1512_v8 }
 0x260   :  { %v2693_v12 = vpop.eup %2692 }
 0x261   :  { %v1496_v60 = vmul.f32 %v2693_v12, %v1493_v5  ;;  %v1514_v54 = vadd.f32 %v2691_v6, %v1513_v10  ;;  %vm1501_vm4 = vweird.f32 %v2693_v12 }
 0x262   :  { %vm1502_vm6 = vmor %vm1500_vm5, %vm1501_vm4 }
 0x263   :  { %v1497_v14 = vsub.f32 1.0, %v1496_v60  ;;  %v1518_v45 = vsel %vm1517_vm2, %v2691_v6, %v1514_v54 }
 0x264   :  { %v1523_v13 = vsel %vm1520_vm3, %v1522_v19, %v1518_v45 }
 0x265   :  { %v1526_v16 = vpack.c.bf16 %v1523_v13, %v1523_v13  ;;  %v1498_v17 = vmul.f32 %v2693_v12, %v1497_v14 }
 0x267   :  { %1680 = vmatmul.bf16.vlgmr.msrb.gmra.mxu3 %v1526_v16  ;;  %v1499_v21 = vadd.f32 %v2693_v12, %v1498_v17 }
 0x269   :  { %v1503_v23 = vsel %vm1502_vm6, %v2693_v12, %v1499_v21 }
 0x26a   :  { %v1508_v24 = vsel %vm1505_vm7, %v1507_v22, %v1503_v23 }
 0x26b   :  { %v1525_v49 = vpack.c.bf16 %v1508_v24, %v1508_v24 }
 0x26d   :  { %1667 = vmatmul.bf16.vlgmr.msrb.gmra.mxu2 %v1525_v49 }
 0x2ea   :  { %v1681_v26 = vpop.f32.mrf.mxu3 }
 0x2f0   :  { %v1668_v29 = vpop.f32.mrf.mxu2 }
 0x2f1   :  { %v1669_v30 = vadd.f32 %v2669_v27, %v1668_v29 }
 0x2f2   :  { %v1683_v31 = vpop.f32.mrf.mxu3 }
 0x2f3   :  { %v1682_v32 = vadd.f32 %v1681_v26, %v1669_v30 }
 0x2f5   :  { %1685 = vst [vmem:[#allocation2] sm:$0xff] %v1682_v32 }
 0x2f6   :  { %1696 = dma.vmem_to_hbm [thread:$0]  %s1692_s17, 128, %s1694_s0, [#allocation3]  }
 0x2f8   :  { %v1670_v33 = vpop.f32.mrf.mxu2 }
 0x2f9   :  { %2718 = dma.done.wait [#allocation3], 128  }
 0x2fa   :  { %2719 = vsyncadd [#allocation3], 4294967168 }
 0x2fb   :  { %1701 = vsyncpa [#allocation3], 1 }

</bundles_post_ra>
